<compile_context>
chip_gen: v6e
topology: v6e:2x2x1
jax: 0.10.0
libtpu: 0.0.40
codegen_flags: <defaults>
</compile_context>

<pallas_src>
import functools

import numpy as np
import jax
import jax.numpy as jnp
from jax import lax
from jax.experimental import pallas as pl
from jax.experimental.pallas import tpu as pltpu

_LH = 8  # left halo on the W (sublane) axis -> sublane-aligned conv1 store


# ----------------------------- fused kernel --------------------------------

def _bottleneck_kernel(*refs, H, W, Cin, P, P4, stride, has_proj, pack_taps):
    """Whole Bottleneck block for one image; all intermediates stay in VMEM."""
    refs = list(refs)
    x_ref = refs.pop(0)                       # (1, H*W, Cin) or (1, H, W, Cin) bf16
    w1_ref, s1_ref, b1_ref = refs.pop(0), refs.pop(0), refs.pop(0)
    w2_ref, s2_ref, b2_ref = refs.pop(0), refs.pop(0), refs.pop(0)
    w3_ref, s3_ref, b3_ref = refs.pop(0), refs.pop(0), refs.pop(0)
    if has_proj:
        ws_ref, ss_ref, bs_ref = refs.pop(0), refs.pop(0), refs.pop(0)
    out_ref = refs.pop(0)                     # (1, Ho*Wo, P4) bf16
    c1_ref = refs.pop(0)                      # (H+2, W+_LH+1, P) bf16 (halo scratch)
    rows_ref = refs.pop(0) if stride > 1 else None
    xsr_ref = refs.pop(0) if (stride > 1 and has_proj) else None

    Ho = (H - 1) // stride + 1
    Wo = (W - 1) // stride + 1
    f32 = jnp.float32
    bdt = c1_ref.dtype

    # ---- conv1 (1x1) + bn1 + relu -> halo-padded VMEM scratch -----------------
    if stride == 1:
        xflat = x_ref[0]                                    # (H*W, Cin), load-ready
    else:
        xflat = x_ref[0].reshape(H * W, Cin)
    a1 = jnp.dot(xflat, w1_ref[...], preferred_element_type=f32)
    a1 = jnp.maximum(a1 * s1_ref[...] + b1_ref[...], 0.0)

    # Zero only the halo (interior is fully overwritten every step; zeroing per
    # step keeps the scratch valid on every core under megacore grid sharding).
    c1_ref[0:1, :, :] = jnp.zeros((1, W + _LH + 1, P), bdt)
    c1_ref[H + 1:H + 2, :, :] = jnp.zeros((1, W + _LH + 1, P), bdt)
    c1_ref[:, _LH - 1:_LH, :] = jnp.zeros((H + 2, 1, P), bdt)
    c1_ref[:, _LH + W:_LH + W + 1, :] = jnp.zeros((H + 2, 1, P), bdt)
    # Sublane-aligned interior store (starts at sublane offset _LH == 8).
    c1_ref[1:H + 1, _LH:_LH + W, :] = a1.astype(bdt).reshape(H, W, P)

    # ---- conv2 (3x3, stride, pad=1) + bn2 + relu ------------------------------
    # Shifted 1x1 matmuls read straight out of the halo scratch; accumulation is
    # carried in a value (no acc_ref VMEM round trips).  With pack_taps the 9
    # taps are packed along K into a single (Ho*Wo, 9P) x (9P, P) matmul.
    acc = None
    taps = []
    for kh in range(3):
        if stride > 1:
            rows_ref[...] = c1_ref[pl.ds(kh, Ho, stride=stride), :, :]
        for kw in range(3):
            if stride == 1:
                win = c1_ref[kh:kh + Ho, _LH - 1 + kw:_LH - 1 + kw + Wo, :]
            else:
                win = rows_ref[:, pl.ds(_LH - 1 + kw, Wo, stride=stride), :]
            if pack_taps:
                taps.append(win)
            else:
                d = jnp.dot(win.reshape(Ho * Wo, P), w2_ref[kh * 3 + kw],
                            preferred_element_type=f32)
                acc = d if acc is None else acc + d
    if pack_taps:
        col = jnp.concatenate(taps, axis=-1).reshape(Ho * Wo, 9 * P)
        acc = jnp.dot(col, w2_ref[...], preferred_element_type=f32)
    a2 = jnp.maximum(acc * s2_ref[...] + b2_ref[...], 0.0)

    # ---- conv3 (1x1) + bn3 ----------------------------------------------------
    a3 = jnp.dot(a2.astype(bdt), w3_ref[...], preferred_element_type=f32)
    a3 = a3 * s3_ref[...] + b3_ref[...]

    # ---- shortcut (projection fused into the same kernel) + add + relu --------
    if has_proj:
        if stride == 1:
            xs = x_ref[0]                                   # (H*W, Cin)
        else:
            xsr_ref[...] = x_ref[0, pl.ds(0, Ho, stride=stride), :, :]
            xs = xsr_ref[:, pl.ds(0, Wo, stride=stride), :].reshape(Ho * Wo, Cin)
        sc = jnp.dot(xs, ws_ref[...], preferred_element_type=f32)
        sc = sc * ss_ref[...] + bs_ref[...]
    else:
        sc = x_ref[0].astype(f32)                           # identity (Cin == P4)

    y = jnp.maximum(a3 + sc, 0.0)
    # Flat (1, Ho*Wo, P4) bf16 store: lane-dense, no in-kernel relayout.
    out_ref[...] = y.reshape(1, Ho * Wo, P4).astype(out_ref.dtype)


# ----------------------------- helpers --------------------------------------

def _padded_bytes(shape, itemsize):
    """VMEM footprint of an array padded to (8, 128) tiles on its last two dims."""
    shape = tuple(int(d) for d in shape)
    if len(shape) == 1:
        shape = (1,) + shape
    lead = 1
    for d in shape[:-2]:
        lead *= d
    sub = -(-shape[-2] // 8) * 8
    lane = -(-shape[-1] // 128) * 128
    return lead * sub * lane * itemsize


def _vmem_cap_bytes():
    """Physical VMEM minus headroom (per-generation cap; v7x has only 64 MiB)."""
    try:
        return int(pltpu.get_tpu_info().vmem_capacity_bytes) - (8 << 20)
    except Exception:
        return 56 << 20  # safe on every generation


def _bottleneck_fused(x_nhwc, params, stride, expansion, pack_taps=None):
    """Fused block: NHWC bf16 in -> (N, Ho, Wo, 4*planes) bf16 out."""
    N, H, W, Cin = x_nhwc.shape
    P = params["w1"].shape[1]
    P4 = expansion * P
    Ho = (H - 1) // stride + 1
    Wo = (W - 1) // stride + 1
    has_proj = "ws" in params
    if pack_taps is None:
        # TODO(synk): extend the packed-K path to P == 64 (planes-64 stages)
        #             once sub-128-lane concatenation is validated per target.
        pack_taps = (P % 128 == 0)
    bf = jnp.bfloat16

    if stride == 1:
        x_in = x_nhwc.reshape(N, H * W, Cin)                # layout-free in HBM
        x_spec = pl.BlockSpec((1, H * W, Cin), lambda n: (n, 0, 0))
    else:
        x_in = x_nhwc
        x_spec = pl.BlockSpec((1, H, W, Cin), lambda n: (n, 0, 0, 0))

    w2 = params["w2"]
    if pack_taps:
        w2 = w2.reshape(9 * P, P)
        w2_spec = pl.BlockSpec((9 * P, P), lambda n: (0, 0))
    else:
        w2_spec = pl.BlockSpec((9, P, P), lambda n: (0, 0, 0))

    args = [
        x_in.astype(bf),
        params["w1"].astype(bf), params["s1"].reshape(1, P), params["b1"].reshape(1, P),
        w2.astype(bf), params["s2"].reshape(1, P), params["b2"].reshape(1, P),
        params["w3"].astype(bf), params["s3"].reshape(1, P4), params["b3"].reshape(1, P4),
    ]
    in_specs = [
        x_spec,
        pl.BlockSpec((Cin, P), lambda n: (0, 0)),
        pl.BlockSpec((1, P), lambda n: (0, 0)),
        pl.BlockSpec((1, P), lambda n: (0, 0)),
        w2_spec,
        pl.BlockSpec((1, P), lambda n: (0, 0)),
        pl.BlockSpec((1, P), lambda n: (0, 0)),
        pl.BlockSpec((P, P4), lambda n: (0, 0)),
        pl.BlockSpec((1, P4), lambda n: (0, 0)),
        pl.BlockSpec((1, P4), lambda n: (0, 0)),
    ]
    if has_proj:
        args += [params["ws"].astype(bf),
                 params["ss"].reshape(1, P4), params["bs"].reshape(1, P4)]
        in_specs += [pl.BlockSpec((Cin, P4), lambda n: (0, 0)),
                     pl.BlockSpec((1, P4), lambda n: (0, 0)),
                     pl.BlockSpec((1, P4), lambda n: (0, 0))]

    scratch_defs = [((H + 2, W + _LH + 1, P), bf)]          # halo conv1 scratch
    if stride > 1:
        scratch_defs.append(((Ho, W + _LH + 1, P), bf))     # row-subsampled c1 rows
        if has_proj:
            scratch_defs.append(((Ho, W, Cin), bf))         # row-subsampled x rows

    # Shape-derived VMEM budget, capped at the physical VMEM of this generation.
    est = 2 * (_padded_bytes(x_in.shape[1:], 2) + _padded_bytes((Ho * Wo, P4), 2))
    est += 2 * sum(_padded_bytes(a.shape, a.dtype.itemsize) for a in args[1:])
    est += sum(_padded_bytes(s, np.dtype(d).itemsize) for s, d in scratch_defs)
    est += _padded_bytes((Ho * Wo, P), 4) + _padded_bytes((Ho * Wo, 9 * P), 2)
    vmem_limit = int(min(_vmem_cap_bytes(), max(2 * est, 32 << 20)))

    kernel = functools.partial(_bottleneck_kernel, H=H, W=W, Cin=Cin, P=P, P4=P4,
                               stride=stride, has_proj=has_proj, pack_taps=pack_taps)

    out = pl.pallas_call(
        kernel,
        out_shape=jax.ShapeDtypeStruct((N, Ho * Wo, P4), bf),
        grid=(N,),
        in_specs=in_specs,
        out_specs=pl.BlockSpec((1, Ho * Wo, P4), lambda n: (n, 0, 0)),
        scratch_shapes=[pltpu.VMEM(s, d) for s, d in scratch_defs],
        compiler_params=pltpu.CompilerParams(
            dimension_semantics=("parallel",),
            vmem_limit_bytes=vmem_limit,
        ),
    )(*args)
    return out.reshape(N, Ho, Wo, P4)                       # free reshape of the slab


# ------------------- conservative fallback (wrapper im2col) -----------------

def _mm_bn_kernel(x_ref, w_ref, s_ref, b_ref, o_ref, *, relu):
    acc = jnp.dot(x_ref[...].astype(jnp.bfloat16), w_ref[...].astype(jnp.bfloat16),
                  preferred_element_type=jnp.float32)
    acc = acc * s_ref[...] + b_ref[...]
    if relu:
        acc = jnp.maximum(acc, 0.0)
    o_ref[...] = acc.astype(o_ref.dtype)


def _mm_bn_res_kernel(x_ref, w_ref, s_ref, b_ref, r_ref, o_ref, *, relu):
    acc = jnp.dot(x_ref[...].astype(jnp.bfloat16), w_ref[...].astype(jnp.bfloat16),
                  preferred_element_type=jnp.float32)
    acc = acc * s_ref[...] + b_ref[...] + r_ref[...].astype(jnp.float32)
    if relu:
        acc = jnp.maximum(acc, 0.0)
    o_ref[...] = acc.astype(o_ref.dtype)


def _pick_tile(m, target=512):
    t = min(target, m) // 8 * 8
    while t >= 8:
        if m % t == 0:
            return t
        t -= 8
    return m


def _fused_matmul_bn(x, w, scale, bias, residual=None, relu=True):
    M, K = x.shape
    N = w.shape[1]
    tm = _pick_tile(M)
    in_specs = [pl.BlockSpec((tm, K), lambda i: (i, 0)),
                pl.BlockSpec((K, N), lambda i: (0, 0)),
                pl.BlockSpec((1, N), lambda i: (0, 0)),
                pl.BlockSpec((1, N), lambda i: (0, 0))]
    args = [x, w, scale.reshape(1, N), bias.reshape(1, N)]
    if residual is not None:
        in_specs.append(pl.BlockSpec((tm, N), lambda i: (i, 0)))
        args.append(residual)
        kernel = functools.partial(_mm_bn_res_kernel, relu=relu)
    else:
        kernel = functools.partial(_mm_bn_kernel, relu=relu)
    return pl.pallas_call(
        kernel,
        out_shape=jax.ShapeDtypeStruct((M, N), jnp.float32),
        grid=(M // tm,),
        in_specs=in_specs,
        out_specs=pl.BlockSpec((tm, N), lambda i: (i, 0)),
        compiler_params=pltpu.CompilerParams(dimension_semantics=("parallel",)),
    )(*args)


def _im2col_3x3(x_nhwc, stride):
    N, H, W, C = x_nhwc.shape
    Ho = (H - 1) // stride + 1
    Wo = (W - 1) // stride + 1
    xp = jnp.pad(x_nhwc, ((0, 0), (1, 1), (1, 1), (0, 0)))
    cols = []
    for kh in range(3):
        for kw in range(3):
            cols.append(xp[:, kh:kh + stride * (Ho - 1) + 1:stride,
                            kw:kw + stride * (Wo - 1) + 1:stride, :])
    patches = jnp.stack(cols, axis=-2)                      # (N, Ho, Wo, 9, C)
    return patches.reshape(N * Ho * Wo, 9 * C), Ho, Wo


def _bottleneck_separate(x_nhwc, params, stride, expansion):
    """Fallback: wrapper-side im2col + per-stage fused matmul+BN kernels."""
    N, H, W, Cin = x_nhwc.shape
    P = params["w1"].shape[1]
    P4 = expansion * P
    out = _fused_matmul_bn(x_nhwc.reshape(-1, Cin), params["w1"],
                           params["s1"], params["b1"], relu=True).reshape(N, H, W, P)
    patches, Ho, Wo = _im2col_3x3(out, stride)
    out = _fused_matmul_bn(patches, params["w2"].reshape(9 * P, P),
                           params["s2"], params["b2"], relu=True)
    if "ws" in params:
        xs = x_nhwc[:, ::stride, ::stride, :].reshape(-1, Cin)
        shortcut = _fused_matmul_bn(xs, params["ws"], params["ss"], params["bs"],
                                    relu=False)
    else:
        shortcut = x_nhwc.reshape(-1, Cin)
    out = _fused_matmul_bn(out, params["w3"], params["s3"], params["b3"],
                           residual=shortcut, relu=True)
    return out.reshape(N, Ho, Wo, P4)


# ---------------- trace-time path selection (cached compile probe) ----------

_FUSED_OK_CACHE = {}


def _fused_compiles(x_shape, params, stride, expansion):
    """AOT-compile probe for the fused kernel (guards only the strided stride>1
    window reads; no execution, no result-level fallback)."""
    key = (tuple(int(d) for d in x_shape), stride, expansion,
           tuple(sorted((k, tuple(int(d) for d in v.shape)) for k, v in params.items())))
    hit = _FUSED_OK_CACHE.get(key)
    if hit is not None:
        return hit
    x_s = jax.ShapeDtypeStruct(tuple(int(d) for d in x_shape), jnp.bfloat16)
    p_s = {k: jax.ShapeDtypeStruct(tuple(int(d) for d in v.shape), jnp.float32)
           for k, v in params.items()}
    fn = functools.partial(_bottleneck_fused, stride=stride, expansion=expansion)
    try:
        jax.jit(fn).lower(x_s, p_s).compile()
        ok = True
    except Exception:           # Mosaic lowering / compile failure only
        ok = False
    _FUSED_OK_CACHE[key] = ok
    return ok


# ------------------------------ public forward ------------------------------

def bottleneck_forward(x_nchw, params, stride, expansion=4):
    """NCHW in / NCHW out, matching the PyTorch module's forward (eval-mode BN).

    Internally NHWC / bf16; _bottleneck_fused can be chained directly in
    NHWC/bf16 when building a full ResNet (the transposes here only match the
    PyTorch interface)."""
    N, Cin, H, W = x_nchw.shape
    P = params["w1"].shape[1]
    if "ws" not in params and (stride != 1 or Cin != expansion * P):
        raise ValueError("identity shortcut requires stride == 1 and "
                         "in_planes == expansion * planes")

    # Transpose fused with the bf16 cast (single XLA op under jit).
    x_nhwc = jnp.transpose(x_nchw, (0, 2, 3, 1)).astype(jnp.bfloat16)

    use_fused = True
    if stride > 1:
        use_fused = _fused_compiles((N, H, W, Cin), params, stride, expansion)
    if use_fused:
        y = _bottleneck_fused(x_nhwc, params, stride, expansion)
    else:
        y = _bottleneck_separate(x_nhwc, params, stride, expansion)
    return jnp.transpose(y, (0, 3, 1, 2)).astype(jnp.float32)


# ------------------------------- parameters ---------------------------------

def _fold_bn(gamma, beta, mean, var, eps=1e-5):
    scale = gamma / jnp.sqrt(var + eps)
    bias = beta - mean * scale
    return scale.astype(jnp.float32), bias.astype(jnp.float32)


def init_bottleneck_params(key, in_planes, planes, stride, expansion=4):
    ks = jax.random.split(key, 8)
    p = {}

    def conv_w(k, shape):               # PyTorch layout (out, in, kh, kw)
        fan_in = shape[1] * shape[2] * shape[3]
        return jax.random.normal(k, shape, jnp.float32) / jnp.sqrt(fan_in)

    def bn_p(k, c):
        k1, k2, k3, k4 = jax.random.split(k, 4)
        gamma = jax.random.uniform(k1, (c,), jnp.float32, 0.5, 1.5)
        beta = 0.1 * jax.random.normal(k2, (c,), jnp.float32)
        mean = 0.1 * jax.random.normal(k3, (c,), jnp.float32)
        var = jax.random.uniform(k4, (c,), jnp.float32, 0.5, 1.5)
        return gamma, beta, mean, var

    out_planes = expansion * planes
    w1 = conv_w(ks[0], (planes, in_planes, 1, 1))
    p["w1"] = w1.reshape(planes, in_planes).T                              # (Cin, P)
    p["s1"], p["b1"] = _fold_bn(*bn_p(ks[1], planes))
    w2 = conv_w(ks[2], (planes, planes, 3, 3))
    p["w2_t"] = w2                                                         # OIHW (reference)
    p["w2"] = jnp.transpose(w2, (2, 3, 1, 0)).reshape(9, planes, planes)   # (tap, Pin, Pout)
    p["s2"], p["b2"] = _fold_bn(*bn_p(ks[3], planes))
    w3 = conv_w(ks[4], (out_planes, planes, 1, 1))
    p["w3"] = w3.reshape(out_planes, planes).T                             # (P, 4P)
    p["s3"], p["b3"] = _fold_bn(*bn_p(ks[5], out_planes))
    if stride != 1 or in_planes != out_planes:
        ws = conv_w(ks[6], (out_planes, in_planes, 1, 1))
        p["ws"] = ws.reshape(out_planes, in_planes).T                      # (Cin, 4P)
        p["ss"], p["bs"] = _fold_bn(*bn_p(ks[7], out_planes))
    return p


# -------------------------------- reference ---------------------------------

def _reference_forward(x_nchw, params, stride, expansion=4):
    """Pure-JAX f32 reference using lax.conv_general_dilated (NCHW/OIHW)."""
    x = x_nchw.astype(jnp.float32)
    planes = params["w1"].shape[1]
    out_planes = expansion * planes
    dn = ("NCHW", "OIHW", "NCHW")

    def conv(v, w_oihw, stride=1, pad=0):
        return lax.conv_general_dilated(v, w_oihw, (stride, stride),
                                        [(pad, pad), (pad, pad)], dimension_numbers=dn)

    def bn(v, s, b):
        return v * s[None, :, None, None] + b[None, :, None, None]

    w1 = params["w1"].T.reshape(planes, -1, 1, 1)
    w3 = params["w3"].T.reshape(out_planes, planes, 1, 1)
    out = jax.nn.relu(bn(conv(x, w1), params["s1"], params["b1"]))
    out = jax.nn.relu(bn(conv(out, params["w2_t"], stride=stride, pad=1),
                         params["s2"], params["b2"]))
    out = bn(conv(out, w3), params["s3"], params["b3"])
    if "ws" in params:
        ws = params["ws"].T.reshape(out_planes, -1, 1, 1)
        sc = bn(conv(x, ws, stride=stride), params["ss"], params["bs"])
    else:
        sc = x
    return jax.nn.relu(out + sc)


# ---------------------------------- main -------------------------------------

if __name__ == "__main__":
    key = jax.random.PRNGKey(0)
    k_x, k_p, k_x2, k_p2 = jax.random.split(key, 4)

    fwd = jax.jit(bottleneck_forward, static_argnums=(2, 3))

    # case 1: stride-2 block with projection shortcut (down-sampling block)
    batch, in_planes, planes, spatial, stride = 2, 4, 4, 16, 2
    x = jax.random.normal(k_x, (batch, in_planes, spatial, spatial), jnp.float32)
    params = init_bottleneck_params(k_p, in_planes, planes, stride)
    y = jax.block_until_ready(fwd(x, params, stride, 4))
    y_ref = _reference_forward(x, params, stride)
    assert y.shape == (batch, 4 * planes, spatial // stride, spatial // stride), y.shape
    assert jnp.allclose(y, y_ref, atol=5e-2, rtol=5e-2), float(jnp.max(jnp.abs(y - y_ref)))

    # case 2: stride-1 block with identity shortcut
    in_planes2, stride2 = 16, 1
    x2 = jax.random.normal(k_x2, (batch, in_planes2, spatial, spatial), jnp.float32)
    params2 = init_bottleneck_params(k_p2, in_planes2, planes, stride2)
    y2 = jax.block_until_ready(fwd(x2, params2, stride2, 4))
    y2_ref = _reference_forward(x2, params2, stride2)
    assert y2.shape == (batch, 4 * planes, spatial, spatial), y2.shape
    assert jnp.allclose(y2, y2_ref, atol=5e-2, rtol=5e-2), float(jnp.max(jnp.abs(y2 - y2_ref)))

    print("KERNEL_OK")
</pallas_src>

<mosaic_0001>
module attributes {stable_mosaic.version = 11 : i64} {
  func.func @_mm_bn_kernel(%arg0: i32, %arg1: memref<512x4xbf16, #tpu.memory_space<vmem>>, %arg2: memref<4x4xf32, #tpu.memory_space<vmem>>, %arg3: memref<1x4xf32, #tpu.memory_space<vmem>>, %arg4: memref<1x4xf32, #tpu.memory_space<vmem>>, %arg5: memref<512x4xf32, #tpu.memory_space<vmem>>) attributes {dimension_semantics = [#tpu.dimension_semantics<parallel>], iteration_bounds = array<i64: 1>, scalar_prefetch = 0 : i64, scratch_operands = 0 : i64, tpu.core_type = #tpu.core_type<tc>, window_params = [{transform_indices = @transform_0, window_bounds = array<i64: 512, 4>}, {pipeline_mode = #tpu.pipeline_mode<synchronous>, transform_indices = @transform_1, window_bounds = array<i64: 4, 4>}, {pipeline_mode = #tpu.pipeline_mode<synchronous>, transform_indices = @transform_2, window_bounds = array<i64: 1, 4>}, {pipeline_mode = #tpu.pipeline_mode<synchronous>, transform_indices = @transform_3, window_bounds = array<i64: 1, 4>}, {transform_indices = @transform_4, window_bounds = array<i64: 512, 4>}]} {
    %c0 = arith.constant 0 : index
    %c0_0 = arith.constant 0 : index
    %0 = vector.load %arg1[%c0, %c0_0] : memref<512x4xbf16, #tpu.memory_space<vmem>>, vector<512x4xbf16>
    %c0_1 = arith.constant 0 : index
    %c0_2 = arith.constant 0 : index
    %1 = vector.load %arg2[%c0_1, %c0_2] : memref<4x4xf32, #tpu.memory_space<vmem>>, vector<4x4xf32>
    %2 = arith.truncf %1 : vector<4x4xf32> to vector<4x4xbf16>
    %cst = arith.constant dense<0.000000e+00> : vector<512x4xf32>
    %3 = tpu.matmul %0, %2, %cst {dimension_numbers = #tpu.dot_dimension_numbers<[1], [0], [0], [1], [0, 0, 1, 1], [], []>} : vector<512x4xbf16>, vector<4x4xbf16>, vector<512x4xf32> -> vector<512x4xf32>
    %c0_3 = arith.constant 0 : index
    %c0_4 = arith.constant 0 : index
    %4 = vector.load %arg3[%c0_3, %c0_4] : memref<1x4xf32, #tpu.memory_space<vmem>>, vector<1x4xf32>
    %5 = vector.broadcast %4 : vector<1x4xf32> to vector<512x4xf32>
    %6 = arith.mulf %3, %5 : vector<512x4xf32>
    %c0_5 = arith.constant 0 : index
    %c0_6 = arith.constant 0 : index
    %7 = vector.load %arg4[%c0_5, %c0_6] : memref<1x4xf32, #tpu.memory_space<vmem>>, vector<1x4xf32>
    %8 = vector.broadcast %7 : vector<1x4xf32> to vector<512x4xf32>
    %9 = arith.addf %6, %8 : vector<512x4xf32>
    %cst_7 = arith.constant 0.000000e+00 : f32
    %10 = vector.broadcast %cst_7 : f32 to vector<512x4xf32>
    %11 = arith.maximumf %9, %10 : vector<512x4xf32>
    %c0_8 = arith.constant 0 : index
    %c0_9 = arith.constant 0 : index
    %12 = vector.load %arg5[%c0_8, %c0_9] : memref<512x4xf32, #tpu.memory_space<vmem>>, vector<512x4xf32>
    tpu.vector_store %arg5[%c0_8, %c0_9], %11 {strides = array<i32>} : memref<512x4xf32, #tpu.memory_space<vmem>>, vector<512x4xf32>,
    return
  }
  func.func @transform_0(%arg0: i32) -> (i32, i32) {
    %c0_i32 = arith.constant 0 : i32
    %c0_i32_0 = arith.constant 0 : i32
    return %arg0, %c0_i32 : i32, i32
  }
  func.func @transform_1(%arg0: i32) -> (i32, i32) {
    %c0_i32 = arith.constant 0 : i32
    %c0_i32_0 = arith.constant 0 : i32
    %c0_i32_1 = arith.constant 0 : i32
    return %c0_i32, %c0_i32_0 : i32, i32
  }
  func.func @transform_2(%arg0: i32) -> (i32, i32) {
    %c0_i32 = arith.constant 0 : i32
    %c0_i32_0 = arith.constant 0 : i32
    %c0_i32_1 = arith.constant 0 : i32
    return %c0_i32, %c0_i32_0 : i32, i32
  }
  func.func @transform_3(%arg0: i32) -> (i32, i32) {
    %c0_i32 = arith.constant 0 : i32
    %c0_i32_0 = arith.constant 0 : i32
    %c0_i32_1 = arith.constant 0 : i32
    return %c0_i32, %c0_i32_0 : i32, i32
  }
  func.func @transform_4(%arg0: i32) -> (i32, i32) {
    %c0_i32 = arith.constant 0 : i32
    %c0_i32_0 = arith.constant 0 : i32
    return %arg0, %c0_i32 : i32, i32
  }
}

module attributes {stable_mosaic.version = 11 : i64} {
  func.func @_mm_bn_kernel(%arg0: i32, %arg1: memref<128x36xf32, #tpu.memory_space<vmem>>, %arg2: memref<36x4xf32, #tpu.memory_space<vmem>>, %arg3: memref<1x4xf32, #tpu.memory_space<vmem>>, %arg4: memref<1x4xf32, #tpu.memory_space<vmem>>, %arg5: memref<128x4xf32, #tpu.memory_space<vmem>>) attributes {dimension_semantics = [#tpu.dimension_semantics<parallel>], iteration_bounds = array<i64: 1>, scalar_prefetch = 0 : i64, scratch_operands = 0 : i64, tpu.core_type = #tpu.core_type<tc>, window_params = [{transform_indices = @transform_0, window_bounds = array<i64: 128, 36>}, {pipeline_mode = #tpu.pipeline_mode<synchronous>, transform_indices = @transform_1, window_bounds = array<i64: 36, 4>}, {pipeline_mode = #tpu.pipeline_mode<synchronous>, transform_indices = @transform_2, window_bounds = array<i64: 1, 4>}, {pipeline_mode = #tpu.pipeline_mode<synchronous>, transform_indices = @transform_3, window_bounds = array<i64: 1, 4>}, {transform_indices = @transform_4, window_bounds = array<i64: 128, 4>}]} {
    %c0 = arith.constant 0 : index
    %c0_0 = arith.constant 0 : index
    %0 = vector.load %arg1[%c0, %c0_0] : memref<128x36xf32, #tpu.memory_space<vmem>>, vector<128x36xf32>
    %1 = arith.truncf %0 : vector<128x36xf32> to vector<128x36xbf16>
    %c0_1 = arith.constant 0 : index
    %c0_2 = arith.constant 0 : index
    %2 = vector.load %arg2[%c0_1, %c0_2] : memref<36x4xf32, #tpu.memory_space<vmem>>, vector<36x4xf32>
    %3 = arith.truncf %2 : vector<36x4xf32> to vector<36x4xbf16>
    %cst = arith.constant dense<0.000000e+00> : vector<128x4xf32>
    %4 = tpu.matmul %1, %3, %cst {dimension_numbers = #tpu.dot_dimension_numbers<[1], [0], [0], [1], [0, 0, 1, 1], [], []>} : vector<128x36xbf16>, vector<36x4xbf16>, vector<128x4xf32> -> vector<128x4xf32>
    %c0_3 = arith.constant 0 : index
    %c0_4 = arith.constant 0 : index
    %5 = vector.load %arg3[%c0_3, %c0_4] : memref<1x4xf32, #tpu.memory_space<vmem>>, vector<1x4xf32>
    %6 = vector.broadcast %5 : vector<1x4xf32> to vector<128x4xf32>
    %7 = arith.mulf %4, %6 : vector<128x4xf32>
    %c0_5 = arith.constant 0 : index
    %c0_6 = arith.constant 0 : index
    %8 = vector.load %arg4[%c0_5, %c0_6] : memref<1x4xf32, #tpu.memory_space<vmem>>, vector<1x4xf32>
    %9 = vector.broadcast %8 : vector<1x4xf32> to vector<128x4xf32>
    %10 = arith.addf %7, %9 : vector<128x4xf32>
    %cst_7 = arith.constant 0.000000e+00 : f32
    %11 = vector.broadcast %cst_7 : f32 to vector<128x4xf32>
    %12 = arith.maximumf %10, %11 : vector<128x4xf32>
    %c0_8 = arith.constant 0 : index
    %c0_9 = arith.constant 0 : index
    %13 = vector.load %arg5[%c0_8, %c0_9] : memref<128x4xf32, #tpu.memory_space<vmem>>, vector<128x4xf32>
    tpu.vector_store %arg5[%c0_8, %c0_9], %12 {strides = array<i32>} : memref<128x4xf32, #tpu.memory_space<vmem>>, vector<128x4xf32>,
    return
  }
  func.func @transform_0(%arg0: i32) -> (i32, i32) {
    %c0_i32 = arith.constant 0 : i32
    %c0_i32_0 = arith.constant 0 : i32
    return %arg0, %c0_i32 : i32, i32
  }
  func.func @transform_1(%arg0: i32) -> (i32, i32) {
    %c0_i32 = arith.constant 0 : i32
    %c0_i32_0 = arith.constant 0 : i32
    %c0_i32_1 = arith.constant 0 : i32
    return %c0_i32, %c0_i32_0 : i32, i32
  }
  func.func @transform_2(%arg0: i32) -> (i32, i32) {
    %c0_i32 = arith.constant 0 : i32
    %c0_i32_0 = arith.constant 0 : i32
    %c0_i32_1 = arith.constant 0 : i32
    return %c0_i32, %c0_i32_0 : i32, i32
  }
  func.func @transform_3(%arg0: i32) -> (i32, i32) {
    %c0_i32 = arith.constant 0 : i32
    %c0_i32_0 = arith.constant 0 : i32
    %c0_i32_1 = arith.constant 0 : i32
    return %c0_i32, %c0_i32_0 : i32, i32
  }
  func.func @transform_4(%arg0: i32) -> (i32, i32) {
    %c0_i32 = arith.constant 0 : i32
    %c0_i32_0 = arith.constant 0 : i32
    return %arg0, %c0_i32 : i32, i32
  }
}

module attributes {stable_mosaic.version = 11 : i64} {
  func.func @_mm_bn_res_kernel(%arg0: i32, %arg1: memref<128x4xf32, #tpu.memory_space<vmem>>, %arg2: memref<4x16xf32, #tpu.memory_space<vmem>>, %arg3: memref<1x16xf32, #tpu.memory_space<vmem>>, %arg4: memref<1x16xf32, #tpu.memory_space<vmem>>, %arg5: memref<128x16xf32, #tpu.memory_space<vmem>>, %arg6: memref<128x16xf32, #tpu.memory_space<vmem>>) attributes {dimension_semantics = [#tpu.dimension_semantics<parallel>], iteration_bounds = array<i64: 1>, scalar_prefetch = 0 : i64, scratch_operands = 0 : i64, tpu.core_type = #tpu.core_type<tc>, window_params = [{transform_indices = @transform_0, window_bounds = array<i64: 128, 4>}, {pipeline_mode = #tpu.pipeline_mode<synchronous>, transform_indices = @transform_1, window_bounds = array<i64: 4, 16>}, {pipeline_mode = #tpu.pipeline_mode<synchronous>, transform_indices = @transform_2, window_bounds = array<i64: 1, 16>}, {pipeline_mode = #tpu.pipeline_mode<synchronous>, transform_indices = @transform_3, window_bounds = array<i64: 1, 16>}, {transform_indices = @transform_4, window_bounds = array<i64: 128, 16>}, {transform_indices = @transform_5, window_bounds = array<i64: 128, 16>}]} {
    %c0 = arith.constant 0 : index
    %c0_0 = arith.constant 0 : index
    %0 = vector.load %arg1[%c0, %c0_0] : memref<128x4xf32, #tpu.memory_space<vmem>>, vector<128x4xf32>
    %1 = arith.truncf %0 : vector<128x4xf32> to vector<128x4xbf16>
    %c0_1 = arith.constant 0 : index
    %c0_2 = arith.constant 0 : index
    %2 = vector.load %arg2[%c0_1, %c0_2] : memref<4x16xf32, #tpu.memory_space<vmem>>, vector<4x16xf32>
    %3 = arith.truncf %2 : vector<4x16xf32> to vector<4x16xbf16>
    %cst = arith.constant dense<0.000000e+00> : vector<128x16xf32>
    %4 = tpu.matmul %1, %3, %cst {dimension_numbers = #tpu.dot_dimension_numbers<[1], [0], [0], [1], [0, 0, 1, 1], [], []>} : vector<128x4xbf16>, vector<4x16xbf16>, vector<128x16xf32> -> vector<128x16xf32>
    %c0_3 = arith.constant 0 : index
    %c0_4 = arith.constant 0 : index
    %5 = vector.load %arg3[%c0_3, %c0_4] : memref<1x16xf32, #tpu.memory_space<vmem>>, vector<1x16xf32>
    %6 = vector.broadcast %5 : vector<1x16xf32> to vector<128x16xf32>
    %7 = arith.mulf %4, %6 : vector<128x16xf32>
    %c0_5 = arith.constant 0 : index
    %c0_6 = arith.constant 0 : index
    %8 = vector.load %arg4[%c0_5, %c0_6] : memref<1x16xf32, #tpu.memory_space<vmem>>, vector<1x16xf32>
    %9 = vector.broadcast %8 : vector<1x16xf32> to vector<128x16xf32>
    %10 = arith.addf %7, %9 : vector<128x16xf32>
    %c0_7 = arith.constant 0 : index
    %c0_8 = arith.constant 0 : index
    %11 = vector.load %arg5[%c0_7, %c0_8] : memref<128x16xf32, #tpu.memory_space<vmem>>, vector<128x16xf32>
    %12 = arith.addf %10, %11 : vector<128x16xf32>
    %cst_9 = arith.constant 0.000000e+00 : f32
    %13 = vector.broadcast %cst_9 : f32 to vector<128x16xf32>
    %14 = arith.maximumf %12, %13 : vector<128x16xf32>
    %c0_10 = arith.constant 0 : index
    %c0_11 = arith.constant 0 : index
    %15 = vector.load %arg6[%c0_10, %c0_11] : memref<128x16xf32, #tpu.memory_space<vmem>>, vector<128x16xf32>
    tpu.vector_store %arg6[%c0_10, %c0_11], %14 {strides = array<i32>} : memref<128x16xf32, #tpu.memory_space<vmem>>, vector<128x16xf32>,
    return
  }
  func.func @transform_0(%arg0: i32) -> (i32, i32) {
    %c0_i32 = arith.constant 0 : i32
    %c0_i32_0 = arith.constant 0 : i32
    return %arg0, %c0_i32 : i32, i32
  }
  func.func @transform_1(%arg0: i32) -> (i32, i32) {
    %c0_i32 = arith.constant 0 : i32
    %c0_i32_0 = arith.constant 0 : i32
    %c0_i32_1 = arith.constant 0 : i32
    return %c0_i32, %c0_i32_0 : i32, i32
  }
  func.func @transform_2(%arg0: i32) -> (i32, i32) {
    %c0_i32 = arith.constant 0 : i32
    %c0_i32_0 = arith.constant 0 : i32
    %c0_i32_1 = arith.constant 0 : i32
    return %c0_i32, %c0_i32_0 : i32, i32
  }
  func.func @transform_3(%arg0: i32) -> (i32, i32) {
    %c0_i32 = arith.constant 0 : i32
    %c0_i32_0 = arith.constant 0 : i32
    %c0_i32_1 = arith.constant 0 : i32
    return %c0_i32, %c0_i32_0 : i32, i32
  }
  func.func @transform_4(%arg0: i32) -> (i32, i32) {
    %c0_i32 = arith.constant 0 : i32
    %c0_i32_0 = arith.constant 0 : i32
    return %arg0, %c0_i32 : i32, i32
  }
  func.func @transform_5(%arg0: i32) -> (i32, i32) {
    %c0_i32 = arith.constant 0 : i32
    %c0_i32_0 = arith.constant 0 : i32
    return %arg0, %c0_i32 : i32, i32
  }
}

module attributes {stable_mosaic.version = 11 : i64} {
  func.func @_mm_bn_kernel(%arg0: i32, %arg1: memref<128x4xbf16, #tpu.memory_space<vmem>>, %arg2: memref<4x16xf32, #tpu.memory_space<vmem>>, %arg3: memref<1x16xf32, #tpu.memory_space<vmem>>, %arg4: memref<1x16xf32, #tpu.memory_space<vmem>>, %arg5: memref<128x16xf32, #tpu.memory_space<vmem>>) attributes {dimension_semantics = [#tpu.dimension_semantics<parallel>], iteration_bounds = array<i64: 1>, scalar_prefetch = 0 : i64, scratch_operands = 0 : i64, tpu.core_type = #tpu.core_type<tc>, window_params = [{transform_indices = @transform_0, window_bounds = array<i64: 128, 4>}, {pipeline_mode = #tpu.pipeline_mode<synchronous>, transform_indices = @transform_1, window_bounds = array<i64: 4, 16>}, {pipeline_mode = #tpu.pipeline_mode<synchronous>, transform_indices = @transform_2, window_bounds = array<i64: 1, 16>}, {pipeline_mode = #tpu.pipeline_mode<synchronous>, transform_indices = @transform_3, window_bounds = array<i64: 1, 16>}, {transform_indices = @transform_4, window_bounds = array<i64: 128, 16>}]} {
    %c0 = arith.constant 0 : index
    %c0_0 = arith.constant 0 : index
    %0 = vector.load %arg1[%c0, %c0_0] : memref<128x4xbf16, #tpu.memory_space<vmem>>, vector<128x4xbf16>
    %c0_1 = arith.constant 0 : index
    %c0_2 = arith.constant 0 : index
    %1 = vector.load %arg2[%c0_1, %c0_2] : memref<4x16xf32, #tpu.memory_space<vmem>>, vector<4x16xf32>
    %2 = arith.truncf %1 : vector<4x16xf32> to vector<4x16xbf16>
    %cst = arith.constant dense<0.000000e+00> : vector<128x16xf32>
    %3 = tpu.matmul %0, %2, %cst {dimension_numbers = #tpu.dot_dimension_numbers<[1], [0], [0], [1], [0, 0, 1, 1], [], []>} : vector<128x4xbf16>, vector<4x16xbf16>, vector<128x16xf32> -> vector<128x16xf32>
    %c0_3 = arith.constant 0 : index
    %c0_4 = arith.constant 0 : index
    %4 = vector.load %arg3[%c0_3, %c0_4] : memref<1x16xf32, #tpu.memory_space<vmem>>, vector<1x16xf32>
    %5 = vector.broadcast %4 : vector<1x16xf32> to vector<128x16xf32>
    %6 = arith.mulf %3, %5 : vector<128x16xf32>
    %c0_5 = arith.constant 0 : index
    %c0_6 = arith.constant 0 : index
    %7 = vector.load %arg4[%c0_5, %c0_6] : memref<1x16xf32, #tpu.memory_space<vmem>>, vector<1x16xf32>
    %8 = vector.broadcast %7 : vector<1x16xf32> to vector<128x16xf32>
    %9 = arith.addf %6, %8 : vector<128x16xf32>
    %c0_7 = arith.constant 0 : index
    %c0_8 = arith.constant 0 : index
    %10 = vector.load %arg5[%c0_7, %c0_8] : memref<128x16xf32, #tpu.memory_space<vmem>>, vector<128x16xf32>
    tpu.vector_store %arg5[%c0_7, %c0_8], %9 {strides = array<i32>} : memref<128x16xf32, #tpu.memory_space<vmem>>, vector<128x16xf32>,
    return
  }
  func.func @transform_0(%arg0: i32) -> (i32, i32) {
    %c0_i32 = arith.constant 0 : i32
    %c0_i32_0 = arith.constant 0 : i32
    return %arg0, %c0_i32 : i32, i32
  }
  func.func @transform_1(%arg0: i32) -> (i32, i32) {
    %c0_i32 = arith.constant 0 : i32
    %c0_i32_0 = arith.constant 0 : i32
    %c0_i32_1 = arith.constant 0 : i32
    return %c0_i32, %c0_i32_0 : i32, i32
  }
  func.func @transform_2(%arg0: i32) -> (i32, i32) {
    %c0_i32 = arith.constant 0 : i32
    %c0_i32_0 = arith.constant 0 : i32
    %c0_i32_1 = arith.constant 0 : i32
    return %c0_i32, %c0_i32_0 : i32, i32
  }
  func.func @transform_3(%arg0: i32) -> (i32, i32) {
    %c0_i32 = arith.constant 0 : i32
    %c0_i32_0 = arith.constant 0 : i32
    %c0_i32_1 = arith.constant 0 : i32
    return %c0_i32, %c0_i32_0 : i32, i32
  }
  func.func @transform_4(%arg0: i32) -> (i32, i32) {
    %c0_i32 = arith.constant 0 : i32
    %c0_i32_0 = arith.constant 0 : i32
    return %arg0, %c0_i32 : i32, i32
  }
}

</mosaic_0001>

<bundles_post_ra>
// kernel: bottleneck_forward.4
= control target key start
LH: loop header
LB: loop body
LE: loop exit
PB: predicated region body
PF: predicated region fallthrough
CT: control target
= control target key end

     0   :  { %vm341_vm0 = vcmask 1041408   ;;  %vm244_vm1 = vcmask 31744   ;;  %s1659_s1 = inlined_call_operand.vmem [shape: f32[4,4], index: 1, kind: input, shape index: {}]   ;;  %s1660_s0 = inlined_call_operand.vmem [shape: bf16[512,4], index: 0, kind: input, shape index: {}]   ;;  %s1661_s2 = inlined_call_operand.vmem [shape: f32[1,4], index: 2, kind: input, shape index: {}]   ;;  %s1662_s3 = inlined_call_operand.vmem [shape: f32[1,4], index: 3, kind: input, shape index: {}]   ;;  %s1663_s4 = inlined_call_operand.vmem [shape: f32[512,4], index: 4, kind: output, shape index: {}]  }
   0x1   :  { %v82_v0 = vld [vmem:[%s1659_s1] sm:$0xf]  ;;  %v1079_v5 = vld [vmem:[%s1660_s0 + $0x8] sm:$0xff]   ;;  %v1081_v7 = vld [vmem:[%s1660_s0 + $0x10] sm:$0xff]  }
   0x2   :  { %v83_v1 = vpack.c.bf16 %v82_v0, %v82_v0  ;;  %v1077_v2 = vld [vmem:[%s1660_s0] sm:$0xff]   ;;  %v1080_v6 = vld [vmem:[%s1660_s0 + $0x88] sm:$0xff]   ;;  %v1082_v8 = vld [vmem:[%s1660_s0 + $0x90] sm:$0xff]  }
   0x3   :  { %v1078_v3 = vld [vmem:[%s1660_s0 + $0x80] sm:$0xff]   ;;  %1009 = vmatprep.mubr.msk.bf16.mxu0 %vm244_vm1, %v1077_v2  ;;  %v1083_v9 = vld [vmem:[%s1660_s0 + $0x18] sm:$0xff]   ;;  %v1087_v13 = vld [vmem:[%s1660_s0 + $0x28] sm:$0xff]  }
   0x4   :  { %1075 = vmatprep.subr.msk.bf16.mxu0 %vm341_vm0, %v83_v1  ;;  %1076 = vmatprep.subr.msk.bf16.mxu1 %vm341_vm0, %v83_v1  ;;  %v343_v4 = vsel %vm341_vm0, %v83_v1, 0  ;;  %v1084_v10 = vld [vmem:[%s1660_s0 + $0x98] sm:$0xff]   ;;  %v1085_v11 = vld [vmem:[%s1660_s0 + $0x20] sm:$0xff]   ;;  %v1088_v14 = vld [vmem:[%s1660_s0 + $0xa8] sm:$0xff]  }
   0x5   :  { %1008 = vmatpush3.bf16.msra.mxu0 %v343_v4  ;;  %1074 = vmatpush3.bf16.msra.mxu1 %v343_v4  ;;  %v1086_v12 = vld [vmem:[%s1660_s0 + $0xa0] sm:$0xff]   ;;  %v1089_v15 = vld [vmem:[%s1660_s0 + $0x30] sm:$0xff]   ;;  %v1091_v17 = vld [vmem:[%s1660_s0 + $0x38] sm:$0xff]  }
   0x6   :  { %1041 = vmatprep.mubr.msk.bf16.mxu1 %vm244_vm1, %v1078_v3  ;;  %v1090_v16 = vld [vmem:[%s1660_s0 + $0xb0] sm:$0xff]   ;;  %v1092_v18 = vld [vmem:[%s1660_s0 + $0xb8] sm:$0xff]   ;;  %v1093_v19 = vld [vmem:[%s1660_s0 + $0x40] sm:$0xff]  }
   0x7   :  { %v1094_v20 = vld [vmem:[%s1660_s0 + $0xc0] sm:$0xff]   ;;  %v1095_v21 = vld [vmem:[%s1660_s0 + $0x48] sm:$0xff]   ;;  %v1097_v23 = vld [vmem:[%s1660_s0 + $0x50] sm:$0xff]  }
   0x8   :  { %1010 = vmatmul.mubr.msk.bf16.vlgmr.msra.gmra.mxu0 %vm244_vm1, %v1079_v5  ;;  %1042 = vmatmul.mubr.msk.bf16.vlgmr.msra.gmra.mxu1 %vm244_vm1, %v1080_v6  ;;  %v1096_v22 = vld [vmem:[%s1660_s0 + $0xc8] sm:$0xff]   ;;  %v1098_v24 = vld [vmem:[%s1660_s0 + $0xd0] sm:$0xff]   ;;  %v1099_v25 = vld [vmem:[%s1660_s0 + $0x58] sm:$0xff]  }
   0x9   :  { %1013 = vmatprep.mubr.msk.bf16.mxu0 %vm244_vm1, %v1081_v7  ;;  %1045 = vmatprep.mubr.msk.bf16.mxu1 %vm244_vm1, %v1082_v8  ;;  %v1100_v26 = vld [vmem:[%s1660_s0 + $0xd8] sm:$0xff]   ;;  %v1101_v27 = vld [vmem:[%s1660_s0 + $0x60] sm:$0xff]   ;;  %v1103_v29 = vld [vmem:[%s1660_s0 + $0x68] sm:$0xff]  }
   0xa   :  { %v1102_v28 = vld [vmem:[%s1660_s0 + $0xe0] sm:$0xff]   ;;  %v1104_v30 = vld [vmem:[%s1660_s0 + $0xe8] sm:$0xff]   ;;  %v1105_v31 = vld [vmem:[%s1660_s0 + $0x70] sm:$0xff]  }
   0xb   :  { %v1106_v32 = vld [vmem:[%s1660_s0 + $0xf0] sm:$0xff]   ;;  %v1107_v33 = vld [vmem:[%s1660_s0 + $0x78] sm:$0xff]   ;;  %v1268_v35 = vld [vmem:[%s1661_s2] ss:$0 sm:$0xff] }
   0xc   :  { %v1108_v34 = vld [vmem:[%s1660_s0 + $0xf8] sm:$0xff]   ;;  %v1273_v37 = vld [vmem:[%s1662_s3] ss:$0 sm:$0xff] }
  0x10   :  { %1014 = vmatmul.mubr.msk.bf16.gmra.mxu0 %vm244_vm1, %v1083_v9  ;;  %1046 = vmatmul.mubr.msk.bf16.gmra.mxu1 %vm244_vm1, %v1084_v10 }
  0x11   :  { %1017 = vmatprep.mubr.msk.bf16.mxu0 %vm244_vm1, %v1085_v11  ;;  %1049 = vmatprep.mubr.msk.bf16.mxu1 %vm244_vm1, %v1086_v12 }
  0x18   :  { %1018 = vmatmul.mubr.msk.bf16.gmra.mxu0 %vm244_vm1, %v1087_v13  ;;  %1050 = vmatmul.mubr.msk.bf16.gmra.mxu1 %vm244_vm1, %v1088_v14 }
  0x19   :  { %1021 = vmatprep.mubr.msk.bf16.mxu0 %vm244_vm1, %v1089_v15  ;;  %1053 = vmatprep.mubr.msk.bf16.mxu1 %vm244_vm1, %v1090_v16 }
  0x20   :  { %1022 = vmatmul.mubr.msk.bf16.gmra.mxu0 %vm244_vm1, %v1091_v17  ;;  %1054 = vmatmul.mubr.msk.bf16.gmra.mxu1 %vm244_vm1, %v1092_v18 }
  0x21   :  { %1025 = vmatprep.mubr.msk.bf16.mxu0 %vm244_vm1, %v1093_v19  ;;  %1057 = vmatprep.mubr.msk.bf16.mxu1 %vm244_vm1, %v1094_v20 }
  0x28   :  { %1026 = vmatmul.mubr.msk.bf16.gmra.mxu0 %vm244_vm1, %v1095_v21  ;;  %1058 = vmatmul.mubr.msk.bf16.gmra.mxu1 %vm244_vm1, %v1096_v22 }
  0x29   :  { %1029 = vmatprep.mubr.msk.bf16.mxu0 %vm244_vm1, %v1097_v23  ;;  %1061 = vmatprep.mubr.msk.bf16.mxu1 %vm244_vm1, %v1098_v24 }
  0x30   :  { %1030 = vmatmul.mubr.msk.bf16.gmra.mxu0 %vm244_vm1, %v1099_v25  ;;  %1062 = vmatmul.mubr.msk.bf16.gmra.mxu1 %vm244_vm1, %v1100_v26 }
  0x31   :  { %1033 = vmatprep.mubr.msk.bf16.mxu0 %vm244_vm1, %v1101_v27  ;;  %1065 = vmatprep.mubr.msk.bf16.mxu1 %vm244_vm1, %v1102_v28 }
  0x38   :  { %1034 = vmatmul.mubr.msk.bf16.gmra.mxu0 %vm244_vm1, %v1103_v29  ;;  %1066 = vmatmul.mubr.msk.bf16.gmra.mxu1 %vm244_vm1, %v1104_v30 }
  0x39   :  { %1037 = vmatprep.mubr.msk.bf16.mxu0 %vm244_vm1, %v1105_v31  ;;  %1069 = vmatprep.mubr.msk.bf16.mxu1 %vm244_vm1, %v1106_v32 }
  0x40   :  { %1038 = vmatmul.mubr.msk.bf16.gmra.mxu0 %vm244_vm1, %v1107_v33  ;;  %1070 = vmatmul.mubr.msk.bf16.gmra.mxu1 %vm244_vm1, %v1108_v34 }
  0xc8   :  { %v1011_v36 = vpop.f32.mrf.mxu0  ;;  %v1043_v38 = vpop.f32.mrf.mxu1 }
  0xc9   :  { %v643_v39 = vmul.f32 %v1011_v36, %v1268_v35  ;;  %v675_v40 = vmul.f32 %v1043_v38, %v1268_v35 }
  0xca   :  { %v379_v41 = vpop.f32.mrf.mxu0  ;;  %v507_v42 = vpop.f32.mrf.mxu1 }
  0xcb   :  { %v714_v43 = vadd.f32 %v1273_v37, %v643_v39  ;;  %v746_v44 = vadd.f32 %v1273_v37, %v675_v40  ;;  %v641_v45 = vmul.f32 %v1268_v35, %v379_v41  ;;  %v673_v46 = vmul.f32 %v1268_v35, %v507_v42 }
  0xcc   :  { %v1012_v47 = vpop.f32.mrf.mxu0  ;;  %v1044_v48 = vpop.f32.mrf.mxu1 }
  0xcd   :  { %v778_v49 = vmax.f32 %v714_v43, 0.0  ;;  %v810_v50 = vmax.f32 %v746_v44, 0.0  ;;  %v712_v51 = vadd.f32 %v1273_v37, %v641_v45  ;;  %v744_v52 = vadd.f32 %v1273_v37, %v673_v46 }
  0xce   :  { %v644_v53 = vmul.f32 %v1012_v47, %v1268_v35  ;;  %v676_v54 = vmul.f32 %v1044_v48, %v1268_v35  ;;  %v382_v55 = vpop.f32.mrf.mxu0  ;;  %v510_v56 = vpop.f32.mrf.mxu1 }
  0xcf   :  { %842 = vst.msk [vmem:[%s1663_s4 + $0x10] sm:$0xff] %vm244_vm1, %v778_v49  ;;  %874 = vst.msk [vmem:[%s1663_s4 + $0x110] sm:$0xff] %vm244_vm1, %v810_v50  ;;  %v776_v57 = vmax.f32 %v712_v51, 0.0  ;;  %v808_v58 = vmax.f32 %v744_v52, 0.0  ;;  %v642_v59 = vmul.f32 %v1268_v35, %v382_v55  ;;  %v674_v60 = vmul.f32 %v1268_v35, %v510_v56 }
  0xd0   :  { %v715_v61 = vadd.f32 %v1273_v37, %v644_v53  ;;  %v747_v62 = vadd.f32 %v1273_v37, %v676_v54  ;;  %v1015_v63 = vpop.f32.mrf.mxu0  ;;  %v1047_v0 = vpop.f32.mrf.mxu1 }
  0xd1   :  { %840 = vst.msk [vmem:[%s1663_s4] sm:$0xff] %vm244_vm1, %v776_v57  ;;  %872 = vst.msk [vmem:[%s1663_s4 + $0x100] sm:$0xff] %vm244_vm1, %v808_v58  ;;  %v713_v1 = vadd.f32 %v1273_v37, %v642_v59  ;;  %v745_v2 = vadd.f32 %v1273_v37, %v674_v60  ;;  %v647_v3 = vmul.f32 %v1015_v63, %v1268_v35 }
  0xd2   :  { %v679_v4 = vmul.f32 %v1047_v0, %v1268_v35  ;;  %v779_v5 = vmax.f32 %v715_v61, 0.0  ;;  %v811_v6 = vmax.f32 %v747_v62, 0.0  ;;  %v395_v7 = vpop.f32.mrf.mxu0  ;;  %v523_v8 = vpop.f32.mrf.mxu1 }
  0xd3   :  { %v777_v9 = vmax.f32 %v713_v1, 0.0  ;;  %v809_v10 = vmax.f32 %v745_v2, 0.0  ;;  %v718_v11 = vadd.f32 %v1273_v37, %v647_v3  ;;  %v645_v13 = vmul.f32 %v1268_v35, %v395_v7 }
  0xd4   :  { %v750_v12 = vadd.f32 %v1273_v37, %v679_v4  ;;  %843 = vst.msk [vmem:[%s1663_s4 + $0x18] sm:$0xff] %vm244_vm1, %v779_v5  ;;  %875 = vst.msk [vmem:[%s1663_s4 + $0x118] sm:$0xff] %vm244_vm1, %v811_v6  ;;  %v677_v14 = vmul.f32 %v1268_v35, %v523_v8  ;;  %v1016_v15 = vpop.f32.mrf.mxu0  ;;  %v1048_v16 = vpop.f32.mrf.mxu1 }
  0xd5   :  { %841 = vst.msk [vmem:[%s1663_s4 + $0x8] sm:$0xff] %vm244_vm1, %v777_v9  ;;  %873 = vst.msk [vmem:[%s1663_s4 + $0x108] sm:$0xff] %vm244_vm1, %v809_v10  ;;  %v782_v17 = vmax.f32 %v718_v11, 0.0  ;;  %v648_v19 = vmul.f32 %v1016_v15, %v1268_v35  ;;  %v680_v20 = vmul.f32 %v1048_v16, %v1268_v35  ;;  %v716_v21 = vadd.f32 %v1273_v37, %v645_v13 }
  0xd6   :  { %v814_v18 = vmax.f32 %v750_v12, 0.0  ;;  %v748_v22 = vadd.f32 %v1273_v37, %v677_v14  ;;  %v398_v23 = vpop.f32.mrf.mxu0  ;;  %v526_v24 = vpop.f32.mrf.mxu1 }
  0xd7   :  { %846 = vst.msk [vmem:[%s1663_s4 + $0x30] sm:$0xff] %vm244_vm1, %v782_v17  ;;  %v719_v25 = vadd.f32 %v1273_v37, %v648_v19  ;;  %v751_v26 = vadd.f32 %v1273_v37, %v680_v20  ;;  %v646_v27 = vmul.f32 %v1268_v35, %v398_v23  ;;  %v678_v28 = vmul.f32 %v1268_v35, %v526_v24 }
  0xd8   :  { %878 = vst.msk [vmem:[%s1663_s4 + $0x130] sm:$0xff] %vm244_vm1, %v814_v18  ;;  %v780_v29 = vmax.f32 %v716_v21, 0.0  ;;  %v812_v30 = vmax.f32 %v748_v22, 0.0  ;;  %v1019_v31 = vpop.f32.mrf.mxu0  ;;  %v1051_v32 = vpop.f32.mrf.mxu1 }
  0xd9   :  { %v783_v33 = vmax.f32 %v719_v25, 0.0  ;;  %v815_v34 = vmax.f32 %v751_v26, 0.0  ;;  %v717_v36 = vadd.f32 %v1273_v37, %v646_v27  ;;  %v749_v38 = vadd.f32 %v1273_v37, %v678_v28 }
  0xda   :  { %844 = vst.msk [vmem:[%s1663_s4 + $0x20] sm:$0xff] %vm244_vm1, %v780_v29  ;;  %876 = vst.msk [vmem:[%s1663_s4 + $0x120] sm:$0xff] %vm244_vm1, %v812_v30  ;;  %v651_v39 = vmul.f32 %v1019_v31, %v1268_v35  ;;  %v683_v40 = vmul.f32 %v1051_v32, %v1268_v35  ;;  %v411_v41 = vpop.f32.mrf.mxu0  ;;  %v539_v42 = vpop.f32.mrf.mxu1 }
  0xdb   :  { %847 = vst.msk [vmem:[%s1663_s4 + $0x38] sm:$0xff] %vm244_vm1, %v783_v33  ;;  %879 = vst.msk [vmem:[%s1663_s4 + $0x138] sm:$0xff] %vm244_vm1, %v815_v34  ;;  %v781_v43 = vmax.f32 %v717_v36, 0.0  ;;  %v813_v44 = vmax.f32 %v749_v38, 0.0  ;;  %v649_v45 = vmul.f32 %v1268_v35, %v411_v41  ;;  %v681_v46 = vmul.f32 %v1268_v35, %v539_v42 }
  0xdc   :  { %v722_v47 = vadd.f32 %v1273_v37, %v651_v39  ;;  %v754_v48 = vadd.f32 %v1273_v37, %v683_v40  ;;  %v1020_v49 = vpop.f32.mrf.mxu0  ;;  %v1052_v50 = vpop.f32.mrf.mxu1 }
  0xdd   :  { %845 = vst.msk [vmem:[%s1663_s4 + $0x28] sm:$0xff] %vm244_vm1, %v781_v43  ;;  %877 = vst.msk [vmem:[%s1663_s4 + $0x128] sm:$0xff] %vm244_vm1, %v813_v44  ;;  %v720_v51 = vadd.f32 %v1273_v37, %v649_v45  ;;  %v752_v52 = vadd.f32 %v1273_v37, %v681_v46  ;;  %v652_v53 = vmul.f32 %v1020_v49, %v1268_v35 }
  0xde   :  { %v684_v54 = vmul.f32 %v1052_v50, %v1268_v35  ;;  %v786_v55 = vmax.f32 %v722_v47, 0.0  ;;  %v818_v56 = vmax.f32 %v754_v48, 0.0  ;;  %v414_v57 = vpop.f32.mrf.mxu0  ;;  %v542_v58 = vpop.f32.mrf.mxu1 }
  0xdf   :  { %v784_v59 = vmax.f32 %v720_v51, 0.0  ;;  %v816_v60 = vmax.f32 %v752_v52, 0.0  ;;  %v723_v61 = vadd.f32 %v1273_v37, %v652_v53  ;;  %v650_v63 = vmul.f32 %v1268_v35, %v414_v57 }
  0xe0   :  { %v755_v62 = vadd.f32 %v1273_v37, %v684_v54  ;;  %850 = vst.msk [vmem:[%s1663_s4 + $0x50] sm:$0xff] %vm244_vm1, %v786_v55  ;;  %882 = vst.msk [vmem:[%s1663_s4 + $0x150] sm:$0xff] %vm244_vm1, %v818_v56  ;;  %v682_v0 = vmul.f32 %v1268_v35, %v542_v58  ;;  %v1023_v1 = vpop.f32.mrf.mxu0  ;;  %v1055_v2 = vpop.f32.mrf.mxu1 }
  0xe1   :  { %848 = vst.msk [vmem:[%s1663_s4 + $0x40] sm:$0xff] %vm244_vm1, %v784_v59  ;;  %880 = vst.msk [vmem:[%s1663_s4 + $0x140] sm:$0xff] %vm244_vm1, %v816_v60  ;;  %v787_v3 = vmax.f32 %v723_v61, 0.0  ;;  %v655_v5 = vmul.f32 %v1023_v1, %v1268_v35  ;;  %v687_v6 = vmul.f32 %v1055_v2, %v1268_v35  ;;  %v721_v7 = vadd.f32 %v1273_v37, %v650_v63 }
  0xe2   :  { %v819_v4 = vmax.f32 %v755_v62, 0.0  ;;  %v753_v8 = vadd.f32 %v1273_v37, %v682_v0  ;;  %v427_v9 = vpop.f32.mrf.mxu0  ;;  %v555_v10 = vpop.f32.mrf.mxu1 }
  0xe3   :  { %851 = vst.msk [vmem:[%s1663_s4 + $0x58] sm:$0xff] %vm244_vm1, %v787_v3  ;;  %v726_v11 = vadd.f32 %v1273_v37, %v655_v5  ;;  %v758_v12 = vadd.f32 %v1273_v37, %v687_v6  ;;  %v653_v13 = vmul.f32 %v1268_v35, %v427_v9  ;;  %v685_v14 = vmul.f32 %v1268_v35, %v555_v10 }
  0xe4   :  { %883 = vst.msk [vmem:[%s1663_s4 + $0x158] sm:$0xff] %vm244_vm1, %v819_v4  ;;  %v785_v15 = vmax.f32 %v721_v7, 0.0  ;;  %v817_v16 = vmax.f32 %v753_v8, 0.0  ;;  %v1024_v17 = vpop.f32.mrf.mxu0  ;;  %v1056_v18 = vpop.f32.mrf.mxu1 }
  0xe5   :  { %v790_v19 = vmax.f32 %v726_v11, 0.0  ;;  %v822_v20 = vmax.f32 %v758_v12, 0.0  ;;  %v724_v21 = vadd.f32 %v1273_v37, %v653_v13  ;;  %v756_v22 = vadd.f32 %v1273_v37, %v685_v14 }
  0xe6   :  { %849 = vst.msk [vmem:[%s1663_s4 + $0x48] sm:$0xff] %vm244_vm1, %v785_v15  ;;  %881 = vst.msk [vmem:[%s1663_s4 + $0x148] sm:$0xff] %vm244_vm1, %v817_v16  ;;  %v656_v23 = vmul.f32 %v1024_v17, %v1268_v35  ;;  %v688_v24 = vmul.f32 %v1056_v18, %v1268_v35  ;;  %v430_v25 = vpop.f32.mrf.mxu0  ;;  %v558_v26 = vpop.f32.mrf.mxu1 }
  0xe7   :  { %854 = vst.msk [vmem:[%s1663_s4 + $0x70] sm:$0xff] %vm244_vm1, %v790_v19  ;;  %886 = vst.msk [vmem:[%s1663_s4 + $0x170] sm:$0xff] %vm244_vm1, %v822_v20  ;;  %v788_v27 = vmax.f32 %v724_v21, 0.0  ;;  %v820_v28 = vmax.f32 %v756_v22, 0.0  ;;  %v654_v29 = vmul.f32 %v1268_v35, %v430_v25  ;;  %v686_v30 = vmul.f32 %v1268_v35, %v558_v26 }
  0xe8   :  { %v727_v31 = vadd.f32 %v1273_v37, %v656_v23  ;;  %v759_v32 = vadd.f32 %v1273_v37, %v688_v24  ;;  %v1027_v33 = vpop.f32.mrf.mxu0  ;;  %v1059_v34 = vpop.f32.mrf.mxu1 }
  0xe9   :  { %852 = vst.msk [vmem:[%s1663_s4 + $0x60] sm:$0xff] %vm244_vm1, %v788_v27  ;;  %884 = vst.msk [vmem:[%s1663_s4 + $0x160] sm:$0xff] %vm244_vm1, %v820_v28  ;;  %v725_v36 = vadd.f32 %v1273_v37, %v654_v29  ;;  %v757_v38 = vadd.f32 %v1273_v37, %v686_v30  ;;  %v659_v39 = vmul.f32 %v1027_v33, %v1268_v35 }
  0xea   :  { %v691_v40 = vmul.f32 %v1059_v34, %v1268_v35  ;;  %v791_v41 = vmax.f32 %v727_v31, 0.0  ;;  %v823_v42 = vmax.f32 %v759_v32, 0.0  ;;  %v443_v43 = vpop.f32.mrf.mxu0  ;;  %v571_v44 = vpop.f32.mrf.mxu1 }
  0xeb   :  { %v789_v45 = vmax.f32 %v725_v36, 0.0  ;;  %v821_v46 = vmax.f32 %v757_v38, 0.0  ;;  %v730_v47 = vadd.f32 %v1273_v37, %v659_v39  ;;  %v657_v49 = vmul.f32 %v1268_v35, %v443_v43 }
  0xec   :  { %v762_v48 = vadd.f32 %v1273_v37, %v691_v40  ;;  %855 = vst.msk [vmem:[%s1663_s4 + $0x78] sm:$0xff] %vm244_vm1, %v791_v41  ;;  %887 = vst.msk [vmem:[%s1663_s4 + $0x178] sm:$0xff] %vm244_vm1, %v823_v42  ;;  %v689_v50 = vmul.f32 %v1268_v35, %v571_v44  ;;  %v1028_v51 = vpop.f32.mrf.mxu0  ;;  %v1060_v52 = vpop.f32.mrf.mxu1 }
  0xed   :  { %853 = vst.msk [vmem:[%s1663_s4 + $0x68] sm:$0xff] %vm244_vm1, %v789_v45  ;;  %885 = vst.msk [vmem:[%s1663_s4 + $0x168] sm:$0xff] %vm244_vm1, %v821_v46  ;;  %v794_v53 = vmax.f32 %v730_v47, 0.0  ;;  %v660_v55 = vmul.f32 %v1028_v51, %v1268_v35  ;;  %v692_v56 = vmul.f32 %v1060_v52, %v1268_v35  ;;  %v728_v57 = vadd.f32 %v1273_v37, %v657_v49 }
  0xee   :  { %v826_v54 = vmax.f32 %v762_v48, 0.0  ;;  %v760_v58 = vadd.f32 %v1273_v37, %v689_v50  ;;  %v446_v59 = vpop.f32.mrf.mxu0  ;;  %v574_v60 = vpop.f32.mrf.mxu1 }
  0xef   :  { %858 = vst.msk [vmem:[%s1663_s4 + $0x90] sm:$0xff] %vm244_vm1, %v794_v53  ;;  %v731_v61 = vadd.f32 %v1273_v37, %v660_v55  ;;  %v763_v62 = vadd.f32 %v1273_v37, %v692_v56  ;;  %v658_v63 = vmul.f32 %v1268_v35, %v446_v59  ;;  %v690_v0 = vmul.f32 %v1268_v35, %v574_v60 }
  0xf0   :  { %890 = vst.msk [vmem:[%s1663_s4 + $0x190] sm:$0xff] %vm244_vm1, %v826_v54  ;;  %v792_v1 = vmax.f32 %v728_v57, 0.0  ;;  %v824_v2 = vmax.f32 %v760_v58, 0.0  ;;  %v1031_v3 = vpop.f32.mrf.mxu0  ;;  %v1063_v4 = vpop.f32.mrf.mxu1 }
  0xf1   :  { %v795_v5 = vmax.f32 %v731_v61, 0.0  ;;  %v827_v6 = vmax.f32 %v763_v62, 0.0  ;;  %v729_v7 = vadd.f32 %v1273_v37, %v658_v63  ;;  %v761_v8 = vadd.f32 %v1273_v37, %v690_v0 }
  0xf2   :  { %856 = vst.msk [vmem:[%s1663_s4 + $0x80] sm:$0xff] %vm244_vm1, %v792_v1  ;;  %888 = vst.msk [vmem:[%s1663_s4 + $0x180] sm:$0xff] %vm244_vm1, %v824_v2  ;;  %v663_v9 = vmul.f32 %v1031_v3, %v1268_v35  ;;  %v695_v10 = vmul.f32 %v1063_v4, %v1268_v35  ;;  %v459_v11 = vpop.f32.mrf.mxu0  ;;  %v587_v12 = vpop.f32.mrf.mxu1 }
  0xf3   :  { %859 = vst.msk [vmem:[%s1663_s4 + $0x98] sm:$0xff] %vm244_vm1, %v795_v5  ;;  %891 = vst.msk [vmem:[%s1663_s4 + $0x198] sm:$0xff] %vm244_vm1, %v827_v6  ;;  %v793_v13 = vmax.f32 %v729_v7, 0.0  ;;  %v825_v14 = vmax.f32 %v761_v8, 0.0  ;;  %v661_v15 = vmul.f32 %v1268_v35, %v459_v11  ;;  %v693_v16 = vmul.f32 %v1268_v35, %v587_v12 }
  0xf4   :  { %v734_v17 = vadd.f32 %v1273_v37, %v663_v9  ;;  %v766_v18 = vadd.f32 %v1273_v37, %v695_v10  ;;  %v1032_v19 = vpop.f32.mrf.mxu0  ;;  %v1064_v20 = vpop.f32.mrf.mxu1 }
  0xf5   :  { %857 = vst.msk [vmem:[%s1663_s4 + $0x88] sm:$0xff] %vm244_vm1, %v793_v13  ;;  %889 = vst.msk [vmem:[%s1663_s4 + $0x188] sm:$0xff] %vm244_vm1, %v825_v14  ;;  %v732_v21 = vadd.f32 %v1273_v37, %v661_v15  ;;  %v764_v22 = vadd.f32 %v1273_v37, %v693_v16  ;;  %v664_v23 = vmul.f32 %v1032_v19, %v1268_v35 }
  0xf6   :  { %v696_v24 = vmul.f32 %v1064_v20, %v1268_v35  ;;  %v798_v25 = vmax.f32 %v734_v17, 0.0  ;;  %v830_v26 = vmax.f32 %v766_v18, 0.0  ;;  %v462_v27 = vpop.f32.mrf.mxu0  ;;  %v590_v28 = vpop.f32.mrf.mxu1 }
  0xf7   :  { %v796_v29 = vmax.f32 %v732_v21, 0.0  ;;  %v828_v30 = vmax.f32 %v764_v22, 0.0  ;;  %v735_v31 = vadd.f32 %v1273_v37, %v664_v23  ;;  %v662_v33 = vmul.f32 %v1268_v35, %v462_v27 }
  0xf8   :  { %v767_v32 = vadd.f32 %v1273_v37, %v696_v24  ;;  %862 = vst.msk [vmem:[%s1663_s4 + $0xb0] sm:$0xff] %vm244_vm1, %v798_v25  ;;  %894 = vst.msk [vmem:[%s1663_s4 + $0x1b0] sm:$0xff] %vm244_vm1, %v830_v26  ;;  %v694_v34 = vmul.f32 %v1268_v35, %v590_v28  ;;  %v1035_v36 = vpop.f32.mrf.mxu0  ;;  %v1067_v38 = vpop.f32.mrf.mxu1 }
  0xf9   :  { %860 = vst.msk [vmem:[%s1663_s4 + $0xa0] sm:$0xff] %vm244_vm1, %v796_v29  ;;  %892 = vst.msk [vmem:[%s1663_s4 + $0x1a0] sm:$0xff] %vm244_vm1, %v828_v30  ;;  %v799_v39 = vmax.f32 %v735_v31, 0.0  ;;  %v667_v41 = vmul.f32 %v1035_v36, %v1268_v35  ;;  %v699_v42 = vmul.f32 %v1067_v38, %v1268_v35  ;;  %v733_v43 = vadd.f32 %v1273_v37, %v662_v33 }
  0xfa   :  { %v831_v40 = vmax.f32 %v767_v32, 0.0  ;;  %v765_v44 = vadd.f32 %v1273_v37, %v694_v34  ;;  %v475_v45 = vpop.f32.mrf.mxu0  ;;  %v603_v46 = vpop.f32.mrf.mxu1 }
  0xfb   :  { %863 = vst.msk [vmem:[%s1663_s4 + $0xb8] sm:$0xff] %vm244_vm1, %v799_v39  ;;  %v738_v47 = vadd.f32 %v1273_v37, %v667_v41  ;;  %v770_v48 = vadd.f32 %v1273_v37, %v699_v42  ;;  %v665_v49 = vmul.f32 %v1268_v35, %v475_v45  ;;  %v697_v50 = vmul.f32 %v1268_v35, %v603_v46 }
  0xfc   :  { %895 = vst.msk [vmem:[%s1663_s4 + $0x1b8] sm:$0xff] %vm244_vm1, %v831_v40  ;;  %v797_v51 = vmax.f32 %v733_v43, 0.0  ;;  %v829_v52 = vmax.f32 %v765_v44, 0.0  ;;  %v1036_v53 = vpop.f32.mrf.mxu0  ;;  %v1068_v54 = vpop.f32.mrf.mxu1 }
  0xfd   :  { %v802_v55 = vmax.f32 %v738_v47, 0.0  ;;  %v834_v56 = vmax.f32 %v770_v48, 0.0  ;;  %v736_v57 = vadd.f32 %v1273_v37, %v665_v49  ;;  %v768_v58 = vadd.f32 %v1273_v37, %v697_v50 }
  0xfe   :  { %861 = vst.msk [vmem:[%s1663_s4 + $0xa8] sm:$0xff] %vm244_vm1, %v797_v51  ;;  %893 = vst.msk [vmem:[%s1663_s4 + $0x1a8] sm:$0xff] %vm244_vm1, %v829_v52  ;;  %v668_v59 = vmul.f32 %v1036_v53, %v1268_v35  ;;  %v700_v60 = vmul.f32 %v1068_v54, %v1268_v35  ;;  %v478_v61 = vpop.f32.mrf.mxu0  ;;  %v606_v62 = vpop.f32.mrf.mxu1 }
  0xff   :  { %866 = vst.msk [vmem:[%s1663_s4 + $0xd0] sm:$0xff] %vm244_vm1, %v802_v55  ;;  %898 = vst.msk [vmem:[%s1663_s4 + $0x1d0] sm:$0xff] %vm244_vm1, %v834_v56  ;;  %v800_v63 = vmax.f32 %v736_v57, 0.0  ;;  %v832_v0 = vmax.f32 %v768_v58, 0.0  ;;  %v666_v1 = vmul.f32 %v1268_v35, %v478_v61  ;;  %v698_v2 = vmul.f32 %v1268_v35, %v606_v62 }
 0x100   :  { %v739_v3 = vadd.f32 %v1273_v37, %v668_v59  ;;  %v771_v4 = vadd.f32 %v1273_v37, %v700_v60  ;;  %v1039_v5 = vpop.f32.mrf.mxu0  ;;  %v1071_v6 = vpop.f32.mrf.mxu1 }
 0x101   :  { %864 = vst.msk [vmem:[%s1663_s4 + $0xc0] sm:$0xff] %vm244_vm1, %v800_v63  ;;  %896 = vst.msk [vmem:[%s1663_s4 + $0x1c0] sm:$0xff] %vm244_vm1, %v832_v0  ;;  %v737_v7 = vadd.f32 %v1273_v37, %v666_v1  ;;  %v769_v8 = vadd.f32 %v1273_v37, %v698_v2  ;;  %v671_v9 = vmul.f32 %v1039_v5, %v1268_v35 }
 0x102   :  { %v703_v10 = vmul.f32 %v1071_v6, %v1268_v35  ;;  %v803_v11 = vmax.f32 %v739_v3, 0.0  ;;  %v835_v12 = vmax.f32 %v771_v4, 0.0  ;;  %v491_v13 = vpop.f32.mrf.mxu0  ;;  %v619_v14 = vpop.f32.mrf.mxu1 }
 0x103   :  { %v801_v15 = vmax.f32 %v737_v7, 0.0  ;;  %v833_v16 = vmax.f32 %v769_v8, 0.0  ;;  %v742_v17 = vadd.f32 %v1273_v37, %v671_v9  ;;  %v669_v19 = vmul.f32 %v1268_v35, %v491_v13 }
 0x104   :  { %v774_v18 = vadd.f32 %v1273_v37, %v703_v10  ;;  %867 = vst.msk [vmem:[%s1663_s4 + $0xd8] sm:$0xff] %vm244_vm1, %v803_v11  ;;  %899 = vst.msk [vmem:[%s1663_s4 + $0x1d8] sm:$0xff] %vm244_vm1, %v835_v12  ;;  %v701_v20 = vmul.f32 %v1268_v35, %v619_v14  ;;  %v1040_v21 = vpop.f32.mrf.mxu0  ;;  %v1072_v22 = vpop.f32.mrf.mxu1 }
 0x105   :  { %865 = vst.msk [vmem:[%s1663_s4 + $0xc8] sm:$0xff] %vm244_vm1, %v801_v15  ;;  %897 = vst.msk [vmem:[%s1663_s4 + $0x1c8] sm:$0xff] %vm244_vm1, %v833_v16  ;;  %v806_v23 = vmax.f32 %v742_v17, 0.0  ;;  %v672_v25 = vmul.f32 %v1040_v21, %v1268_v35  ;;  %v704_v26 = vmul.f32 %v1072_v22, %v1268_v35  ;;  %v740_v27 = vadd.f32 %v1273_v37, %v669_v19 }
 0x106   :  { %v838_v24 = vmax.f32 %v774_v18, 0.0  ;;  %v772_v28 = vadd.f32 %v1273_v37, %v701_v20  ;;  %v494_v29 = vpop.f32.mrf.mxu0  ;;  %v622_v30 = vpop.f32.mrf.mxu1 }
 0x107   :  { %870 = vst.msk [vmem:[%s1663_s4 + $0xf0] sm:$0xff] %vm244_vm1, %v806_v23  ;;  %v743_v31 = vadd.f32 %v1273_v37, %v672_v25  ;;  %v775_v32 = vadd.f32 %v1273_v37, %v704_v26  ;;  %v670_v33 = vmul.f32 %v1268_v35, %v494_v29  ;;  %v702_v34 = vmul.f32 %v1268_v35, %v622_v30 }
 0x108   :  { %902 = vst.msk [vmem:[%s1663_s4 + $0x1f0] sm:$0xff] %vm244_vm1, %v838_v24  ;;  %v804_v36 = vmax.f32 %v740_v27, 0.0  ;;  %v836_v38 = vmax.f32 %v772_v28, 0.0 }
 0x109   :  { %v807_v39 = vmax.f32 %v743_v31, 0.0  ;;  %v839_v40 = vmax.f32 %v775_v32, 0.0  ;;  %v741_v41 = vadd.f32 %v1273_v37, %v670_v33  ;;  %v773_v42 = vadd.f32 %v1273_v37, %v702_v34 }
 0x10a   :  { %868 = vst.msk [vmem:[%s1663_s4 + $0xe0] sm:$0xff] %vm244_vm1, %v804_v36  ;;  %900 = vst.msk [vmem:[%s1663_s4 + $0x1e0] sm:$0xff] %vm244_vm1, %v836_v38 }
 0x10b   :  { %871 = vst.msk [vmem:[%s1663_s4 + $0xf8] sm:$0xff] %vm244_vm1, %v807_v39  ;;  %903 = vst.msk [vmem:[%s1663_s4 + $0x1f8] sm:$0xff] %vm244_vm1, %v839_v40  ;;  %v805_v35 = vmax.f32 %v741_v41, 0.0  ;;  %v837_v37 = vmax.f32 %v773_v42, 0.0 }
 0x10d   :  { %869 = vst.msk [vmem:[%s1663_s4 + $0xe8] sm:$0xff] %vm244_vm1, %v805_v35  ;;  %901 = vst.msk [vmem:[%s1663_s4 + $0x1e8] sm:$0xff] %vm244_vm1, %v837_v37 }

// kernel: bottleneck_forward.5
= control target key start
LH: loop header
LB: loop body
LE: loop exit
PB: predicated region body
PF: predicated region fallthrough
CT: control target
= control target key end

     0   :  { %vm75_vm0 = vcmask 1041408   ;;  %vm50_vm1 = vcmask 293888   ;;  %vm238_vm2 = vcmask 31744   ;;  %s512_s1 = inlined_call_operand.vmem [shape: f32[36,4], index: 1, kind: input, shape index: {}]   ;;  %s513_s0 = inlined_call_operand.vmem [shape: f32[128,36], index: 0, kind: input, shape index: {}]   ;;  %s514_s2 = inlined_call_operand.vmem [shape: f32[1,4], index: 2, kind: input, shape index: {}]   ;;  %s515_s3 = inlined_call_operand.vmem [shape: f32[1,4], index: 3, kind: input, shape index: {}]   ;;  %s516_s4 = inlined_call_operand.vmem [shape: f32[128,4], index: 4, kind: output, shape index: {}]  }
   0x1   :  { %v46_v0 = vld [vmem:[%s512_s1 + $0x20] sm:$0xf]  ;;  %v44_v1 = vld [vmem:[%s512_s1 + $0x10] sm:$0xff]  ;;  %v45_v2 = vld [vmem:[%s512_s1 + $0x18] sm:$0xff] }
   0x2   :  { %v49_v3 = vpack.c.bf16 %v46_v0, %v46_v0  ;;  %v48_v4 = vpack.c.bf16 %v45_v2, %v44_v1  ;;  %v42_v5 = vld [vmem:[%s512_s1] sm:$0xff]  ;;  %v43_v6 = vld [vmem:[%s512_s1 + $0x8] sm:$0xff]  ;;  %v20_v15 = vld [vmem:[%s513_s0 + $0x10] sm:$0xff] }
   0x3   :  { %v18_v7 = vld [vmem:[%s513_s0] sm:$0xff]  ;;  %v19_v8 = vld [vmem:[%s513_s0 + $0x8] sm:$0xff]  ;;  %v47_v14 = vpack.c.bf16 %v43_v6, %v42_v5  ;;  %v21_v16 = vld [vmem:[%s513_s0 + $0x18] sm:$0xff] }
   0x4   :  { %v26_v9 = vld [vmem:[%s513_s0 + $0x40] sm:$0xff]  ;;  %v27_v10 = vld [vmem:[%s513_s0 + $0x48] sm:$0xff]  ;;  %308 = vmatprep.subr.msk.bf16.mxu0 %vm75_vm0, %v49_v3  ;;  %309 = vmatprep.subr.msk.bf16.mxu1 %vm75_vm0, %v49_v3  ;;  %v77_v11 = vsel %vm75_vm0, %v49_v3, 0  ;;  %v34_v12 = vpack.c.bf16 %v19_v8, %v18_v7  ;;  %v28_v17 = vld [vmem:[%s513_s0 + $0x50] sm:$0xff]  ;;  %v35_v23 = vpack.c.bf16 %v21_v16, %v20_v15 }
   0x5   :  { %v38_v13 = vpack.c.bf16 %v27_v10, %v26_v9  ;;  %281 = vmatpush3.bf16.msra.mxu0 %v77_v11  ;;  %305 = vmatpush3.bf16.msra.mxu1 %v77_v11  ;;  %v29_v18 = vld [vmem:[%s513_s0 + $0x58] sm:$0xff]  ;;  %v22_v19 = vld [vmem:[%s513_s0 + $0x20] sm:$0xff]  ;;  %v23_v20 = vld [vmem:[%s513_s0 + $0x28] sm:$0xff] }
   0x6   :  { %282 = vmatprep.subr.bf16.mxu0 %v48_v4  ;;  %303 = vmatprep.subr.bf16.mxu1 %v48_v4  ;;  %v30_v21 = vld [vmem:[%s513_s0 + $0x60] sm:$0xff]  ;;  %v31_v22 = vld [vmem:[%s513_s0 + $0x68] sm:$0xff]  ;;  %v39_v24 = vpack.c.bf16 %v29_v18, %v28_v17  ;;  %v36_v25 = vpack.c.bf16 %v23_v20, %v22_v19  ;;  %v24_v27 = vld [vmem:[%s513_s0 + $0x30] sm:$0xff] }
   0x7   :  { %286 = vmatprep.mubr.msk.bf16.mxu0 %vm50_vm1, %v34_v12  ;;  %294 = vmatprep.mubr.msk.bf16.mxu1 %vm50_vm1, %v38_v13  ;;  %v40_v26 = vpack.c.bf16 %v31_v22, %v30_v21  ;;  %v25_v28 = vld [vmem:[%s513_s0 + $0x38] sm:$0xff]  ;;  %v32_v29 = vld [vmem:[%s513_s0 + $0x70] sm:$0xff]  ;;  %v409_v33 = vld [vmem:[%s514_s2] ss:$0 sm:$0xff] }
   0x8   :  { %v33_v30 = vld [vmem:[%s513_s0 + $0x78] sm:$0xff]  ;;  %v37_v31 = vpack.c.bf16 %v25_v28, %v24_v27  ;;  %v414_v35 = vld [vmem:[%s515_s3] ss:$0 sm:$0xff] }
   0x9   :  { %283 = vmatpush3.bf16.msra.mxu0 %v48_v4  ;;  %306 = vmatpush3.bf16.msra.mxu1 %v48_v4  ;;  %v41_v32 = vpack.c.bf16 %v33_v30, %v32_v29 }
   0xa   :  { %284 = vmatprep.subr.bf16.mxu0 %v47_v14  ;;  %304 = vmatprep.subr.bf16.mxu1 %v47_v14 }
   0xd   :  { %285 = vmatpush3.bf16.msra.mxu0 %v47_v14  ;;  %307 = vmatpush3.bf16.msra.mxu1 %v47_v14 }
  0x10   :  { %287 = vmatmul.mubr.msk.bf16.vlgmr.msra.gmra.mxu0 %vm50_vm1, %v35_v23  ;;  %295 = vmatmul.mubr.msk.bf16.vlgmr.msra.gmra.mxu1 %vm50_vm1, %v39_v24 }
  0x11   :  { %290 = vmatprep.mubr.msk.bf16.mxu0 %vm50_vm1, %v36_v25  ;;  %298 = vmatprep.mubr.msk.bf16.mxu1 %vm50_vm1, %v40_v26 }
  0x18   :  { %291 = vmatmul.mubr.msk.bf16.gmra.mxu0 %vm50_vm1, %v37_v31  ;;  %299 = vmatmul.mubr.msk.bf16.gmra.mxu1 %vm50_vm1, %v41_v32 }
  0xd0   :  { %v288_v34 = vpop.f32.mrf.mxu0  ;;  %v296_v36 = vpop.f32.mrf.mxu1 }
  0xd1   :  { %v185_v37 = vmul.f32 %v288_v34, %v409_v33  ;;  %v193_v38 = vmul.f32 %v296_v36, %v409_v33 }
  0xd2   :  { %v113_v39 = vpop.f32.mrf.mxu0  ;;  %v145_v40 = vpop.f32.mrf.mxu1 }
  0xd3   :  { %v208_v41 = vadd.f32 %v414_v35, %v185_v37  ;;  %v216_v42 = vadd.f32 %v414_v35, %v193_v38  ;;  %v183_v43 = vmul.f32 %v409_v33, %v113_v39  ;;  %v191_v44 = vmul.f32 %v409_v33, %v145_v40 }
  0xd4   :  { %v289_v45 = vpop.f32.mrf.mxu0  ;;  %v297_v46 = vpop.f32.mrf.mxu1 }
  0xd5   :  { %v224_v47 = vmax.f32 %v208_v41, 0.0  ;;  %v232_v48 = vmax.f32 %v216_v42, 0.0  ;;  %v206_v49 = vadd.f32 %v414_v35, %v183_v43  ;;  %v214_v50 = vadd.f32 %v414_v35, %v191_v44 }
  0xd6   :  { %v186_v51 = vmul.f32 %v289_v45, %v409_v33  ;;  %v194_v52 = vmul.f32 %v297_v46, %v409_v33  ;;  %v116_v53 = vpop.f32.mrf.mxu0  ;;  %v148_v54 = vpop.f32.mrf.mxu1 }
  0xd7   :  { %241 = vst.msk [vmem:[%s516_s4 + $0x10] sm:$0xff] %vm238_vm2, %v224_v47  ;;  %249 = vst.msk [vmem:[%s516_s4 + $0x50] sm:$0xff] %vm238_vm2, %v232_v48  ;;  %v222_v55 = vmax.f32 %v206_v49, 0.0  ;;  %v230_v56 = vmax.f32 %v214_v50, 0.0  ;;  %v184_v57 = vmul.f32 %v409_v33, %v116_v53  ;;  %v192_v58 = vmul.f32 %v409_v33, %v148_v54 }
  0xd8   :  { %v209_v59 = vadd.f32 %v414_v35, %v186_v51  ;;  %v217_v60 = vadd.f32 %v414_v35, %v194_v52  ;;  %v292_v61 = vpop.f32.mrf.mxu0  ;;  %v300_v62 = vpop.f32.mrf.mxu1 }
  0xd9   :  { %239 = vst.msk [vmem:[%s516_s4] sm:$0xff] %vm238_vm2, %v222_v55  ;;  %247 = vst.msk [vmem:[%s516_s4 + $0x40] sm:$0xff] %vm238_vm2, %v230_v56  ;;  %v207_v63 = vadd.f32 %v414_v35, %v184_v57  ;;  %v215_v0 = vadd.f32 %v414_v35, %v192_v58  ;;  %v189_v1 = vmul.f32 %v292_v61, %v409_v33 }
  0xda   :  { %v197_v2 = vmul.f32 %v300_v62, %v409_v33  ;;  %v225_v3 = vmax.f32 %v209_v59, 0.0  ;;  %v233_v4 = vmax.f32 %v217_v60, 0.0  ;;  %v129_v5 = vpop.f32.mrf.mxu0  ;;  %v161_v6 = vpop.f32.mrf.mxu1 }
  0xdb   :  { %v223_v7 = vmax.f32 %v207_v63, 0.0  ;;  %v231_v8 = vmax.f32 %v215_v0, 0.0  ;;  %v212_v9 = vadd.f32 %v414_v35, %v189_v1  ;;  %v187_v11 = vmul.f32 %v409_v33, %v129_v5 }
  0xdc   :  { %v220_v10 = vadd.f32 %v414_v35, %v197_v2  ;;  %242 = vst.msk [vmem:[%s516_s4 + $0x18] sm:$0xff] %vm238_vm2, %v225_v3  ;;  %250 = vst.msk [vmem:[%s516_s4 + $0x58] sm:$0xff] %vm238_vm2, %v233_v4  ;;  %v195_v12 = vmul.f32 %v409_v33, %v161_v6  ;;  %v293_v13 = vpop.f32.mrf.mxu0  ;;  %v301_v14 = vpop.f32.mrf.mxu1 }
  0xdd   :  { %240 = vst.msk [vmem:[%s516_s4 + $0x8] sm:$0xff] %vm238_vm2, %v223_v7  ;;  %248 = vst.msk [vmem:[%s516_s4 + $0x48] sm:$0xff] %vm238_vm2, %v231_v8  ;;  %v228_v15 = vmax.f32 %v212_v9, 0.0  ;;  %v190_v17 = vmul.f32 %v293_v13, %v409_v33  ;;  %v198_v18 = vmul.f32 %v301_v14, %v409_v33  ;;  %v210_v19 = vadd.f32 %v414_v35, %v187_v11 }
  0xde   :  { %v236_v16 = vmax.f32 %v220_v10, 0.0  ;;  %v218_v20 = vadd.f32 %v414_v35, %v195_v12  ;;  %v132_v21 = vpop.f32.mrf.mxu0  ;;  %v164_v22 = vpop.f32.mrf.mxu1 }
  0xdf   :  { %245 = vst.msk [vmem:[%s516_s4 + $0x30] sm:$0xff] %vm238_vm2, %v228_v15  ;;  %v213_v23 = vadd.f32 %v414_v35, %v190_v17  ;;  %v221_v24 = vadd.f32 %v414_v35, %v198_v18  ;;  %v188_v25 = vmul.f32 %v409_v33, %v132_v21  ;;  %v196_v26 = vmul.f32 %v409_v33, %v164_v22 }
  0xe0   :  { %253 = vst.msk [vmem:[%s516_s4 + $0x70] sm:$0xff] %vm238_vm2, %v236_v16  ;;  %v226_v27 = vmax.f32 %v210_v19, 0.0  ;;  %v234_v28 = vmax.f32 %v218_v20, 0.0 }
  0xe1   :  { %v229_v29 = vmax.f32 %v213_v23, 0.0  ;;  %v237_v30 = vmax.f32 %v221_v24, 0.0  ;;  %v211_v31 = vadd.f32 %v414_v35, %v188_v25  ;;  %v219_v32 = vadd.f32 %v414_v35, %v196_v26 }
  0xe2   :  { %243 = vst.msk [vmem:[%s516_s4 + $0x20] sm:$0xff] %vm238_vm2, %v226_v27  ;;  %251 = vst.msk [vmem:[%s516_s4 + $0x60] sm:$0xff] %vm238_vm2, %v234_v28 }
  0xe3   :  { %246 = vst.msk [vmem:[%s516_s4 + $0x38] sm:$0xff] %vm238_vm2, %v229_v29  ;;  %254 = vst.msk [vmem:[%s516_s4 + $0x78] sm:$0xff] %vm238_vm2, %v237_v30  ;;  %v227_v33 = vmax.f32 %v211_v31, 0.0  ;;  %v235_v34 = vmax.f32 %v219_v32, 0.0 }
  0xe5   :  { %244 = vst.msk [vmem:[%s516_s4 + $0x28] sm:$0xff] %vm238_vm2, %v227_v33  ;;  %252 = vst.msk [vmem:[%s516_s4 + $0x68] sm:$0xff] %vm238_vm2, %v235_v34 }

// kernel: bottleneck_forward.7
= control target key start
LH: loop header
LB: loop body
LE: loop exit
PB: predicated region body
PF: predicated region fallthrough
CT: control target
= control target key end

     0   :  { %vm73_vm0 = vcmask 1041408   ;;  %vm48_vm1 = vcmask 31744   ;;  %s568_s0 = inlined_call_operand.vmem [shape: f32[128,4], index: 0, kind: input, shape index: {}]   ;;  %s569_s1 = inlined_call_operand.vmem [shape: f32[4,16], index: 1, kind: input, shape index: {}]   ;;  %s570_s2 = inlined_call_operand.vmem [shape: f32[1,16], index: 2, kind: input, shape index: {}]   ;;  %s571_s3 = inlined_call_operand.vmem [shape: f32[1,16], index: 3, kind: input, shape index: {}]   ;;  %s572_s4 = inlined_call_operand.vmem [shape: f32[128,16], index: 4, kind: input, shape index: {}]   ;;  %s573_s5 = inlined_call_operand.hbm [shape: f32[128,16], index: 5, kind: output, shape index: {}]  }
   0x1   :  { %v46_v0 = vld [vmem:[%s569_s1] sm:$0xf]  ;;  %v23_v2 = vld [vmem:[%s568_s0 + $0x8] sm:$0xff]  ;;  %v24_v7 = vld [vmem:[%s568_s0 + $0x10] sm:$0xff] }
   0x2   :  { %v22_v1 = vld [vmem:[%s568_s0] sm:$0xff]  ;;  %v47_v3 = vpack.c.bf16 %v46_v0, %v46_v0  ;;  %v31_v6 = vld [vmem:[%s568_s0 + $0x48] sm:$0xff]  ;;  %v25_v9 = vld [vmem:[%s568_s0 + $0x18] sm:$0xff] }
   0x3   :  { %v38_v4 = vpack.c.bf16 %v23_v2, %v22_v1  ;;  %v30_v5 = vld [vmem:[%s568_s0 + $0x40] sm:$0xff]  ;;  %v32_v10 = vld [vmem:[%s568_s0 + $0x50] sm:$0xff]  ;;  %v33_v11 = vld [vmem:[%s568_s0 + $0x58] sm:$0xff]  ;;  %v39_v13 = vpack.c.bf16 %v25_v9, %v24_v7 }
   0x4   :  { %v42_v8 = vpack.c.bf16 %v31_v6, %v30_v5  ;;  %340 = vmatprep.subr.msk.bf16.mxu0 %vm73_vm0, %v47_v3  ;;  %341 = vmatprep.subr.msk.bf16.mxu1 %vm73_vm0, %v47_v3  ;;  %v75_v12 = vsel %vm73_vm0, %v47_v3, 0  ;;  %v43_v14 = vpack.c.bf16 %v33_v11, %v32_v10  ;;  %v26_v15 = vld [vmem:[%s568_s0 + $0x20] sm:$0xff]  ;;  %v27_v16 = vld [vmem:[%s568_s0 + $0x28] sm:$0xff] }
   0x5   :  { %v34_v17 = vld [vmem:[%s568_s0 + $0x60] sm:$0xff]  ;;  %321 = vmatpush3.bf16.msra.mxu0 %v75_v12  ;;  %339 = vmatpush3.bf16.msra.mxu1 %v75_v12  ;;  %v40_v18 = vpack.c.bf16 %v27_v16, %v26_v15  ;;  %v35_v19 = vld [vmem:[%s568_s0 + $0x68] sm:$0xff] }
   0x6   :  { %322 = vmatprep.mubr.msk.bf16.mxu0 %vm48_vm1, %v38_v4  ;;  %330 = vmatprep.mubr.msk.bf16.mxu1 %vm48_vm1, %v42_v8  ;;  %v44_v20 = vpack.c.bf16 %v35_v19, %v34_v17 }
   0x7   :  { %10 = vsyncpa [#allocation3], 0  ;;  %v28_v21 = vld [vmem:[%s568_s0 + $0x30] sm:$0xff]  ;;  %v29_v22 = vld [vmem:[%s568_s0 + $0x38] sm:$0xff]  ;;  %vm268_vm2 = vcmask 130048   ;;  %s367_s6 = smov [#allocation2]  }
   0x8   :  { %323 = vmatmul.mubr.msk.bf16.vlgmr.msra.gmra.mxu0 %vm48_vm1, %v39_v13  ;;  %331 = vmatmul.mubr.msk.bf16.vlgmr.msra.gmra.mxu1 %vm48_vm1, %v43_v14  ;;  %v36_v23 = vld [vmem:[%s568_s0 + $0x70] sm:$0xff]  ;;  %v37_v24 = vld [vmem:[%s568_s0 + $0x78] sm:$0xff]  ;;  %v41_v25 = vpack.c.bf16 %v29_v22, %v28_v21  ;;  %v462_v27 = vld [vmem:[%s570_s2] ss:$0 sm:$0xff]  ;;  %s290_s2 = sshll.u32 %s367_s6, 4  ;;  %s291_s2 = int_to_ptr.vmem [resolvable:$true] %s290_s2 }
   0x9   :  { %326 = vmatprep.mubr.msk.bf16.mxu0 %vm48_vm1, %v40_v18  ;;  %334 = vmatprep.mubr.msk.bf16.mxu1 %vm48_vm1, %v44_v20  ;;  %v45_v26 = vpack.c.bf16 %v37_v24, %v36_v23  ;;  %v467_v29 = vld [vmem:[%s571_s3] ss:$0 sm:$0xff]  ;;  %v222_v33 = vld [vmem:[%s572_s4 + $0x10] sm:$0xff]  ;;  %v223_v57 = vld [vmem:[%s572_s4 + $0x18] sm:$0xff]  ;;  %p350_p1 = scmp.lt.s32.totalorder %s291_s2, %s291_s2 }
   0xa   :  { %v230_v34 = vld [vmem:[%s572_s4 + $0x50] sm:$0xff]  ;;  %v220_v41 = vld [vmem:[%s572_s4] sm:$0xff]  ;;  %v231_v58 = vld [vmem:[%s572_s4 + $0x58] sm:$0xff] }
   0xb   :  { %v228_v42 = vld [vmem:[%s572_s4 + $0x40] sm:$0xff]  ;;  %v221_v3 = vld [vmem:[%s572_s4 + $0x8] sm:$0xff]  ;;  %v226_v11 = vld [vmem:[%s572_s4 + $0x30] sm:$0xff] }
   0xc   :  { %v229_v4 = vld [vmem:[%s572_s4 + $0x48] sm:$0xff]  ;;  %v234_v12 = vld [vmem:[%s572_s4 + $0x70] sm:$0xff]  ;;  %v224_v23 = vld [vmem:[%s572_s4 + $0x20] sm:$0xff] }
   0xd   :  { %v232_v24 = vld [vmem:[%s572_s4 + $0x60] sm:$0xff] }
  0x10   :  { %327 = vmatmul.mubr.msk.bf16.gmra.mxu0 %vm48_vm1, %v41_v25  ;;  %335 = vmatmul.mubr.msk.bf16.gmra.mxu1 %vm48_vm1, %v45_v26 }
  0xc8   :  { %v324_v28 = vpop.f32.mrf.mxu0  ;;  %v332_v30 = vpop.f32.mrf.mxu1 }
  0xc9   :  { %v183_v31 = vmul.f32 %v324_v28, %v462_v27  ;;  %v191_v32 = vmul.f32 %v332_v30, %v462_v27 }
  0xca   :  { %v111_v35 = vpop.f32.mrf.mxu0  ;;  %v143_v36 = vpop.f32.mrf.mxu1 }
  0xcb   :  { %v206_v37 = vadd.f32 %v467_v29, %v183_v31  ;;  %v214_v38 = vadd.f32 %v467_v29, %v191_v32  ;;  %v181_v39 = vmul.f32 %v462_v27, %v111_v35  ;;  %v189_v40 = vmul.f32 %v462_v27, %v143_v36 }
  0xcc   :  { %v325_v43 = vpop.f32.mrf.mxu0  ;;  %v333_v44 = vpop.f32.mrf.mxu1 }
  0xcd   :  { %v238_v45 = vadd.f32 %v222_v33, %v206_v37  ;;  %v246_v46 = vadd.f32 %v230_v34, %v214_v38  ;;  %v204_v47 = vadd.f32 %v467_v29, %v181_v39  ;;  %v212_v48 = vadd.f32 %v467_v29, %v189_v40 }
  0xce   :  { %v184_v49 = vmul.f32 %v325_v43, %v462_v27  ;;  %v192_v50 = vmul.f32 %v333_v44, %v462_v27  ;;  %v114_v51 = vpop.f32.mrf.mxu0  ;;  %v146_v52 = vpop.f32.mrf.mxu1  ;;  %v227_v43 = vld [vmem:[%s572_s4 + $0x38] sm:$0xff] }
  0xcf   :  { %v254_v53 = vmax.f32 %v238_v45, 0.0  ;;  %v262_v54 = vmax.f32 %v246_v46, 0.0  ;;  %v236_v55 = vadd.f32 %v220_v41, %v204_v47  ;;  %v244_v56 = vadd.f32 %v228_v42, %v212_v48  ;;  %v235_v44 = vld [vmem:[%s572_s4 + $0x78] sm:$0xff] }
  0xd0   :  { %v207_v59 = vadd.f32 %v467_v29, %v184_v49  ;;  %v215_v60 = vadd.f32 %v467_v29, %v192_v50  ;;  %v182_v61 = vmul.f32 %v462_v27, %v114_v51  ;;  %v190_v62 = vmul.f32 %v462_v27, %v146_v52  ;;  %v328_v63 = vpop.f32.mrf.mxu0  ;;  %v336_v0 = vpop.f32.mrf.mxu1  ;;  %v225_v51 = vld [vmem:[%s572_s4 + $0x28] sm:$0xff] }
  0xd1   :  { %271 = vst.msk [vmem:[#allocation2 + $0x10] sm:$0xff] %vm268_vm2, %v254_v53  ;;  %279 = vst.msk [vmem:[#allocation2 + $0x50] sm:$0xff] %vm268_vm2, %v262_v54  ;;  %v252_v1 = vmax.f32 %v236_v55, 0.0  ;;  %v260_v2 = vmax.f32 %v244_v56, 0.0  ;;  %v187_v5 = vmul.f32 %v328_v63, %v462_v27  ;;  %v195_v6 = vmul.f32 %v336_v0, %v462_v27  ;;  %v233_v52 = vld [vmem:[%s572_s4 + $0x68] sm:$0xff]  ;;  %s345_s4 = scalar_lea.vmem %s291_s2, 2048 }
  0xd2   :  { %v239_v7 = vadd.f32 %v223_v57, %v207_v59  ;;  %v247_v8 = vadd.f32 %v231_v58, %v215_v60  ;;  %v205_v9 = vadd.f32 %v467_v29, %v182_v61  ;;  %v213_v10 = vadd.f32 %v467_v29, %v190_v62  ;;  %v127_v13 = vpop.f32.mrf.mxu0  ;;  %v159_v14 = vpop.f32.mrf.mxu1  ;;  %p346_p0 = scmp.ne.s32.totalorder %s291_s2, %s345_s4  ;;  %p351_p2 = scmp.lt.s32.totalorder %s345_s4, %s345_s4 }
  0xd3   :  { %269 = vst.msk [vmem:[#allocation2] sm:$0xff] %vm268_vm2, %v252_v1  ;;  %277 = vst.msk [vmem:[#allocation2 + $0x40] sm:$0xff] %vm268_vm2, %v260_v2  ;;  %v210_v15 = vadd.f32 %v467_v29, %v187_v5  ;;  %v218_v16 = vadd.f32 %v467_v29, %v195_v6  ;;  %v185_v17 = vmul.f32 %v462_v27, %v127_v13 }
  0xd4   :  { %v193_v18 = vmul.f32 %v462_v27, %v159_v14  ;;  %v255_v19 = vmax.f32 %v239_v7, 0.0  ;;  %v263_v20 = vmax.f32 %v247_v8, 0.0  ;;  %v237_v21 = vadd.f32 %v221_v3, %v205_v9  ;;  %v329_v25 = vpop.f32.mrf.mxu0  ;;  %v337_v26 = vpop.f32.mrf.mxu1  ;;  %p352_p3 = por %p351_p2, %p350_p1 }
  0xd5   :  { %v245_v22 = vadd.f32 %v229_v4, %v213_v10  ;;  %v242_v28 = vadd.f32 %v226_v11, %v210_v15  ;;  %v250_v30 = vadd.f32 %v234_v12, %v218_v16  ;;  %v208_v31 = vadd.f32 %v467_v29, %v185_v17 }
  0xd6   :  { %v216_v32 = vadd.f32 %v467_v29, %v193_v18  ;;  %272 = vst.msk [vmem:[#allocation2 + $0x18] sm:$0xff] %vm268_vm2, %v255_v19  ;;  %280 = vst.msk [vmem:[#allocation2 + $0x58] sm:$0xff] %vm268_vm2, %v263_v20  ;;  %v253_v33 = vmax.f32 %v237_v21, 0.0  ;;  %v188_v35 = vmul.f32 %v329_v25, %v462_v27  ;;  %v196_v36 = vmul.f32 %v337_v26, %v462_v27  ;;  %v130_v37 = vpop.f32.mrf.mxu0  ;;  %v162_v38 = vpop.f32.mrf.mxu1  ;;  %p353_p4 = pnand %p352_p3, %p346_p0 }
  0xd7   :  { %v261_v34 = vmax.f32 %v245_v22, 0.0  ;;  %v258_v39 = vmax.f32 %v242_v28, 0.0  ;;  %v266_v40 = vmax.f32 %v250_v30, 0.0  ;;  %v240_v41 = vadd.f32 %v224_v23, %v208_v31 }
  0xd8   :  { %v248_v42 = vadd.f32 %v232_v24, %v216_v32  ;;  %270 = vst.msk [vmem:[#allocation2 + $0x8] sm:$0xff] %vm268_vm2, %v253_v33  ;;  %v211_v45 = vadd.f32 %v467_v29, %v188_v35  ;;  %v219_v46 = vadd.f32 %v467_v29, %v196_v36  ;;  %v186_v47 = vmul.f32 %v462_v27, %v130_v37 }
  0xd9   :  { %278 = vst.msk [vmem:[#allocation2 + $0x48] sm:$0xff] %vm268_vm2, %v261_v34  ;;  %v194_v48 = vmul.f32 %v462_v27, %v162_v38  ;;  %275 = vst.msk [vmem:[#allocation2 + $0x30] sm:$0xff] %vm268_vm2, %v258_v39  ;;  %v256_v49 = vmax.f32 %v240_v41, 0.0 }
  0xda   :  { %283 = vst.msk [vmem:[#allocation2 + $0x70] sm:$0xff] %vm268_vm2, %v266_v40  ;;  %v264_v50 = vmax.f32 %v248_v42, 0.0  ;;  %v243_v53 = vadd.f32 %v227_v43, %v211_v45  ;;  %v251_v54 = vadd.f32 %v235_v44, %v219_v46  ;;  %v209_v55 = vadd.f32 %v467_v29, %v186_v47 }
  0xdb   :  { %v217_v27 = vadd.f32 %v467_v29, %v194_v48  ;;  %273 = vst.msk [vmem:[#allocation2 + $0x20] sm:$0xff] %vm268_vm2, %v256_v49 }
  0xdc   :  { %281 = vst.msk [vmem:[#allocation2 + $0x60] sm:$0xff] %vm268_vm2, %v264_v50  ;;  %v259_v56 = vmax.f32 %v243_v53, 0.0  ;;  %v267_v57 = vmax.f32 %v251_v54, 0.0  ;;  %v241_v58 = vadd.f32 %v225_v51, %v209_v55 }
  0xdd   :  { %v249_v59 = vadd.f32 %v233_v52, %v217_v27 }
  0xde   :  { %276 = vst.msk [vmem:[#allocation2 + $0x38] sm:$0xff] %vm268_vm2, %v259_v56  ;;  %284 = vst.msk [vmem:[#allocation2 + $0x78] sm:$0xff] %vm268_vm2, %v267_v57  ;;  %v257_v60 = vmax.f32 %v241_v58, 0.0 }
  0xdf   :  { %v265_v61 = vmax.f32 %v249_v59, 0.0 }
  0xe0   :  { %274 = vst.msk [vmem:[#allocation2 + $0x28] sm:$0xff] %vm268_vm2, %v257_v60 }
  0xe1   :  { %282 = vst.msk [vmem:[#allocation2 + $0x68] sm:$0xff] %vm268_vm2, %v265_v61 }
  0xe2   :  { %356 = shalt.err (!%p353_p4)
}
  0xe3   :  { %s368_s3 = smov 128   ;;  %s369_s7 = smov 8  }
  0xe4   :  { %296 = dma.vmem_to_hbm [thread:$0]  %s291_s2, 2048, %s573_s5, [#allocation3], %s368_s3, %s368_s3, %s369_s7  }
  0xe5   :  { %365 = dma.done.wait [#allocation3], 2048  }
  0xe6   :  { %366 = vsyncadd [#allocation3], 4294965248 }
  0xe7   :  { %300 = vsyncpa [#allocation3], 1 }

// kernel: bottleneck_forward.6
= control target key start
LH: loop header
LB: loop body
LE: loop exit
PB: predicated region body
PF: predicated region fallthrough
CT: control target
= control target key end

     0   :  { %vm101_vm0 = vcmask 1041408   ;;  %vm76_vm1 = vcmask 31744   ;;  %vm248_vm2 = vcmask 130048   ;;  %s474_s1 = inlined_call_operand.vmem [shape: f32[4,16], index: 1, kind: input, shape index: {}]   ;;  %s475_s0 = inlined_call_operand.vmem [shape: bf16[128,4], index: 0, kind: input, shape index: {}]   ;;  %s476_s2 = inlined_call_operand.vmem [shape: f32[1,16], index: 2, kind: input, shape index: {}]   ;;  %s477_s3 = inlined_call_operand.vmem [shape: f32[1,16], index: 3, kind: input, shape index: {}]   ;;  %s478_s4 = inlined_call_operand.vmem [shape: f32[128,16], index: 4, kind: output, shape index: {}]  }
   0x1   :  { %v34_v0 = vld [vmem:[%s474_s1] sm:$0xf]  ;;  %v320_v5 = vld [vmem:[%s475_s0 + $0x8] sm:$0xff]   ;;  %v322_v7 = vld [vmem:[%s475_s0 + $0x10] sm:$0xff]  }
   0x2   :  { %v35_v1 = vpack.c.bf16 %v34_v0, %v34_v0  ;;  %v318_v2 = vld [vmem:[%s475_s0] sm:$0xff]   ;;  %v321_v6 = vld [vmem:[%s475_s0 + $0x28] sm:$0xff]   ;;  %v323_v8 = vld [vmem:[%s475_s0 + $0x30] sm:$0xff]  }
   0x3   :  { %v319_v3 = vld [vmem:[%s475_s0 + $0x20] sm:$0xff]   ;;  %298 = vmatprep.mubr.msk.bf16.mxu0 %vm76_vm1, %v318_v2  ;;  %v324_v9 = vld [vmem:[%s475_s0 + $0x18] sm:$0xff]  }
   0x4   :  { %316 = vmatprep.subr.msk.bf16.mxu0 %vm101_vm0, %v35_v1  ;;  %317 = vmatprep.subr.msk.bf16.mxu1 %vm101_vm0, %v35_v1  ;;  %v103_v4 = vsel %vm101_vm0, %v35_v1, 0  ;;  %v325_v10 = vld [vmem:[%s475_s0 + $0x38] sm:$0xff]   ;;  %v285_v11 = vld [vmem:[%s476_s2] ss:$0 sm:$0xff] }
   0x5   :  { %297 = vmatpush3.bf16.msra.mxu0 %v103_v4  ;;  %315 = vmatpush3.bf16.msra.mxu1 %v103_v4  ;;  %v392_v13 = vld [vmem:[%s477_s3] ss:$0 sm:$0xff] }
   0x6   :  { %306 = vmatprep.mubr.msk.bf16.mxu1 %vm76_vm1, %v319_v3 }
   0x8   :  { %299 = vmatmul.mubr.msk.bf16.vlgmr.msra.gmra.mxu0 %vm76_vm1, %v320_v5  ;;  %307 = vmatmul.mubr.msk.bf16.vlgmr.msra.gmra.mxu1 %vm76_vm1, %v321_v6 }
   0x9   :  { %302 = vmatprep.mubr.msk.bf16.mxu0 %vm76_vm1, %v322_v7  ;;  %310 = vmatprep.mubr.msk.bf16.mxu1 %vm76_vm1, %v323_v8 }
  0x10   :  { %303 = vmatmul.mubr.msk.bf16.gmra.mxu0 %vm76_vm1, %v324_v9  ;;  %311 = vmatmul.mubr.msk.bf16.gmra.mxu1 %vm76_vm1, %v325_v10 }
  0xc8   :  { %v300_v12 = vpop.f32.mrf.mxu0  ;;  %v308_v14 = vpop.f32.mrf.mxu1 }
  0xc9   :  { %v211_v15 = vmul.f32 %v300_v12, %v285_v11  ;;  %v219_v16 = vmul.f32 %v308_v14, %v285_v11 }
  0xca   :  { %v139_v17 = vpop.f32.mrf.mxu0  ;;  %v171_v18 = vpop.f32.mrf.mxu1 }
  0xcb   :  { %v234_v19 = vadd.f32 %v392_v13, %v211_v15  ;;  %v242_v20 = vadd.f32 %v392_v13, %v219_v16  ;;  %v209_v21 = vmul.f32 %v285_v11, %v139_v17  ;;  %v217_v22 = vmul.f32 %v285_v11, %v171_v18 }
  0xcc   :  { %v301_v23 = vpop.f32.mrf.mxu0  ;;  %v309_v24 = vpop.f32.mrf.mxu1 }
  0xcd   :  { %251 = vst.msk [vmem:[%s478_s4 + $0x10] sm:$0xff] %vm248_vm2, %v234_v19  ;;  %259 = vst.msk [vmem:[%s478_s4 + $0x50] sm:$0xff] %vm248_vm2, %v242_v20  ;;  %v232_v25 = vadd.f32 %v392_v13, %v209_v21  ;;  %v240_v26 = vadd.f32 %v392_v13, %v217_v22  ;;  %v212_v27 = vmul.f32 %v301_v23, %v285_v11 }
  0xce   :  { %v220_v28 = vmul.f32 %v309_v24, %v285_v11  ;;  %v142_v29 = vpop.f32.mrf.mxu0  ;;  %v174_v30 = vpop.f32.mrf.mxu1 }
  0xcf   :  { %249 = vst.msk [vmem:[%s478_s4] sm:$0xff] %vm248_vm2, %v232_v25  ;;  %257 = vst.msk [vmem:[%s478_s4 + $0x40] sm:$0xff] %vm248_vm2, %v240_v26  ;;  %v235_v31 = vadd.f32 %v392_v13, %v212_v27  ;;  %v210_v33 = vmul.f32 %v285_v11, %v142_v29  ;;  %v218_v34 = vmul.f32 %v285_v11, %v174_v30 }
  0xd0   :  { %v243_v32 = vadd.f32 %v392_v13, %v220_v28  ;;  %v304_v35 = vpop.f32.mrf.mxu0  ;;  %v312_v36 = vpop.f32.mrf.mxu1 }
  0xd1   :  { %252 = vst.msk [vmem:[%s478_s4 + $0x18] sm:$0xff] %vm248_vm2, %v235_v31  ;;  %v233_v37 = vadd.f32 %v392_v13, %v210_v33  ;;  %v241_v38 = vadd.f32 %v392_v13, %v218_v34  ;;  %v215_v39 = vmul.f32 %v304_v35, %v285_v11  ;;  %v223_v40 = vmul.f32 %v312_v36, %v285_v11 }
  0xd2   :  { %260 = vst.msk [vmem:[%s478_s4 + $0x58] sm:$0xff] %vm248_vm2, %v243_v32  ;;  %v155_v41 = vpop.f32.mrf.mxu0  ;;  %v187_v42 = vpop.f32.mrf.mxu1 }
  0xd3   :  { %250 = vst.msk [vmem:[%s478_s4 + $0x8] sm:$0xff] %vm248_vm2, %v233_v37  ;;  %258 = vst.msk [vmem:[%s478_s4 + $0x48] sm:$0xff] %vm248_vm2, %v241_v38  ;;  %v238_v43 = vadd.f32 %v392_v13, %v215_v39  ;;  %v246_v44 = vadd.f32 %v392_v13, %v223_v40  ;;  %v213_v45 = vmul.f32 %v285_v11, %v155_v41 }
  0xd4   :  { %v221_v46 = vmul.f32 %v285_v11, %v187_v42  ;;  %v305_v47 = vpop.f32.mrf.mxu0  ;;  %v313_v48 = vpop.f32.mrf.mxu1 }
  0xd5   :  { %255 = vst.msk [vmem:[%s478_s4 + $0x30] sm:$0xff] %vm248_vm2, %v238_v43  ;;  %263 = vst.msk [vmem:[%s478_s4 + $0x70] sm:$0xff] %vm248_vm2, %v246_v44  ;;  %v236_v49 = vadd.f32 %v392_v13, %v213_v45  ;;  %v216_v51 = vmul.f32 %v305_v47, %v285_v11  ;;  %v224_v52 = vmul.f32 %v313_v48, %v285_v11 }
  0xd6   :  { %v244_v50 = vadd.f32 %v392_v13, %v221_v46  ;;  %v158_v53 = vpop.f32.mrf.mxu0  ;;  %v190_v54 = vpop.f32.mrf.mxu1 }
  0xd7   :  { %253 = vst.msk [vmem:[%s478_s4 + $0x20] sm:$0xff] %vm248_vm2, %v236_v49  ;;  %v239_v55 = vadd.f32 %v392_v13, %v216_v51  ;;  %v247_v56 = vadd.f32 %v392_v13, %v224_v52  ;;  %v214_v57 = vmul.f32 %v285_v11, %v158_v53  ;;  %v222_v58 = vmul.f32 %v285_v11, %v190_v54 }
  0xd8   :  { %261 = vst.msk [vmem:[%s478_s4 + $0x60] sm:$0xff] %vm248_vm2, %v244_v50 }
  0xd9   :  { %256 = vst.msk [vmem:[%s478_s4 + $0x38] sm:$0xff] %vm248_vm2, %v239_v55  ;;  %264 = vst.msk [vmem:[%s478_s4 + $0x78] sm:$0xff] %vm248_vm2, %v247_v56  ;;  %v237_v59 = vadd.f32 %v392_v13, %v214_v57  ;;  %v245_v60 = vadd.f32 %v392_v13, %v222_v58 }
  0xdb   :  { %254 = vst.msk [vmem:[%s478_s4 + $0x28] sm:$0xff] %vm248_vm2, %v237_v59  ;;  %262 = vst.msk [vmem:[%s478_s4 + $0x68] sm:$0xff] %vm248_vm2, %v245_v60 }

</bundles_post_ra>
